<compile_context>
chip_gen: v7x
topology: tpu7x:2x2x1
jax: 0.10.0
libtpu: 0.0.40
codegen_flags: <defaults>
</compile_context>

<pallas_src>
import jax
import jax.numpy as jnp
from jax.experimental import pallas as pl
from jax.experimental.pallas import tpu as pltpu


def _round_up(x, m):
    return -(-x // m) * m


# ---------------------------------------------------------------------------
# Fused Pallas kernel
# ---------------------------------------------------------------------------
def _make_fused_cnn_kernel(*, seq_len, kernel_heights, pooling_size, l_work):
    """Build the fused conv+pool+MLP kernel with static hyper-params baked in."""
    kh_max = max(kernel_heights)

    def kernel(x_ref, wc_ref, bc_ref, w1_ref, b1_ref, w2_ref, b2_ref, o_ref):
        # x_ref : (TB, l_work + kh_max - 1, E)   zero-padded embedded tokens
        # wc_ref: (kh_max, E, 128)               packed conv weights (zero-padded)
        # bc_ref: (1, 128)                       packed conv bias
        # w1_ref: (nb*P*128, H_pad)              slab-expanded, row-permuted W1
        # b1_ref: (1, H_pad),  w2_ref: (H_pad, O_pad),  b2_ref: (1, O_pad)
        # o_ref : (TB, O_pad)                    lane-dense padded logits
        TB = x_ref.shape[0]
        E = x_ref.shape[2]
        c_pad = wc_ref.shape[-1]
        M = TB * l_work
        x = x_ref[...]

        # --- conv as dh-accumulation: kh_max matmuls with K=E each ----------
        # (no im2col duplication of x in VMEM; f32 accumulation on the MXU)
        conv = jnp.dot(x[:, 0:l_work, :].reshape(M, E), wc_ref[0],
                       preferred_element_type=jnp.float32)
        for dh in range(1, kh_max):
            conv = conv + jnp.dot(x[:, dh:dh + l_work, :].reshape(M, E),
                                  wc_ref[dh],
                                  preferred_element_type=jnp.float32)

        # --- bias + ReLU in f32; act is a lane-dense (TB, l_work, 128) slab --
        act = jnp.maximum(conv + bc_ref[...], 0.0).reshape(TB, l_work, c_pad)

        # --- per-branch adaptive max pool (PyTorch bin edges) ----------------
        # Each (branch, bin) max is over the FULL 128-lane slab; slabs are
        # stacked along lanes at 128-aligned offsets.  Branch/channel
        # selection lives in zero rows of w1_ref, so foreign-branch lanes
        # (including their padded-tail rows) never reach the output.
        slabs = []
        for j, kh in enumerate(kernel_heights):
            L = seq_len - kh + 1                         # valid conv length
            for i in range(pooling_size):
                s = (i * L) // pooling_size
                e = -((-(i + 1) * L) // pooling_size)    # ceil((i+1)*L/P)
                slabs.append(jnp.max(act[:, s:e, :], axis=1))
        feats = jnp.concatenate(slabs, axis=-1)          # (TB, nb*P*128), f32

        # --- MLP head: relu(feats @ W1 + b1) @ W2 + b2 -----------------------
        # Matmuls in the weights' dtype (bf16 in production), f32 accumulation,
        # elementwise in f32.  Output slab is lane-dense (O padded to 128).
        h = jnp.maximum(
            jnp.dot(feats.astype(w1_ref.dtype), w1_ref[...],
                    preferred_element_type=jnp.float32) + b1_ref[...], 0.0)
        logits = jnp.dot(h.astype(w2_ref.dtype), w2_ref[...],
                         preferred_element_type=jnp.float32) + b2_ref[...]
        o_ref[...] = logits.astype(o_ref.dtype)

    return kernel


# ---------------------------------------------------------------------------
# Parameter packing (one-time plumbing)
# ---------------------------------------------------------------------------
def pack_params(params, kernel_heights, pooling_size, *, lane=128):
    nb = len(kernel_heights)
    kh_max = max(kernel_heights)
    E = params["embedding"].shape[1]
    c_out = params["conv_w"][0].shape[2]
    H = params["w1"].shape[1]
    O = params["w2"].shape[1]

    c_pad = _round_up(nb * c_out, lane)   # lane-dense conv output width
    H_pad = _round_up(H, lane)
    O_pad = _round_up(O, lane)

    # Conv weights: (kh_max, E, c_pad); branch j occupies lanes
    # [j*c_out, (j+1)*c_out); rows dh >= kh_j and padded lanes are zero.
    wc = jnp.zeros((kh_max, E, c_pad), jnp.float32)
    bc = jnp.zeros((1, c_pad), jnp.float32)
    for j, (kh, w, b) in enumerate(
            zip(kernel_heights, params["conv_w"], params["conv_b"])):
        wc = wc.at[:kh, :, j * c_out:(j + 1) * c_out].set(w)
        bc = bc.at[:, j * c_out:(j + 1) * c_out].set(b)

    # W1: PyTorch flattens features as (branch, channel, bin).  The kernel
    # produces (branch, bin) slabs of width c_pad where branch j's channels
    # sit at lanes [j*c_out, (j+1)*c_out).  Permute + scatter into zero rows
    # so the kernel never has to slice sub-128-lane windows.
    w1 = params["w1"].reshape(nb, c_out, pooling_size, H)
    w1 = jnp.transpose(w1, (0, 2, 1, 3))                 # (nb, P, c_out, H)
    w1p = jnp.zeros((nb, pooling_size, c_pad, H_pad), jnp.float32)
    for j in range(nb):
        w1p = w1p.at[j, :, j * c_out:(j + 1) * c_out, :H].set(w1[j])
    w1p = w1p.reshape(nb * pooling_size * c_pad, H_pad)

    b1 = jnp.zeros((1, H_pad), jnp.float32).at[:, :H].set(params["b1"])
    w2 = jnp.zeros((H_pad, O_pad), jnp.float32).at[:H, :O].set(params["w2"])
    b2 = jnp.zeros((1, O_pad), jnp.float32).at[:, :O].set(params["b2"])

    return {
        "embedding": params["embedding"],
        "wc": wc, "bc": bc, "w1": w1p, "b1": b1, "w2": w2, "b2": b2,
        "meta": {"c_out": c_out, "c_pad": c_pad, "H_pad": H_pad, "O_pad": O_pad},
    }


# ---------------------------------------------------------------------------
# Forward wrapper
# ---------------------------------------------------------------------------
def cnn_forward(packed, token_ids, *, kernel_heights, pooling_size, output_size,
                compute_dtype=jnp.bfloat16, batch_tile=8):
    # Embedding lookup (gather) + dropout (identity in eval) -- plain-JAX glue.
    emb = packed["embedding"][token_ids].astype(jnp.float32)   # (B, S, E)
    B, S, E = emb.shape
    meta = packed["meta"]
    O_pad = meta["O_pad"]
    kh_max = max(kernel_heights)
    kh_min = min(kernel_heights)

    # adaptive_max_pool1d precondition (review correctness concern #1).
    for kh in kernel_heights:
        assert S - kh + 1 >= pooling_size, (
            "adaptive_max_pool1d requires conv length >= pooling_size")

    l_max = S - kh_min + 1
    l_work = _round_up(l_max, 8)                 # sublane-aligned work length
    s_pad = l_work + kh_max - 1

    assert batch_tile % 8 == 0                   # sublane-friendly output tile
    TB = batch_tile
    B_pad = _round_up(B, TB)

    # Pad batch + sequence tail with zeros; cast activations/weights to the
    # compute dtype (bf16 in production); biases stay f32.
    x = jnp.pad(emb, ((0, B_pad - B), (0, s_pad - S), (0, 0)))
    x = x.astype(compute_dtype)
    wc = packed["wc"].astype(compute_dtype)
    w1 = packed["w1"].astype(compute_dtype)
    w2 = packed["w2"].astype(compute_dtype)

    kernel = _make_fused_cnn_kernel(
        seq_len=S, kernel_heights=kernel_heights,
        pooling_size=pooling_size, l_work=l_work)

    resident2 = lambda b: (0, 0)
    resident3 = lambda b: (0, 0, 0)

    out = pl.pallas_call(
        kernel,
        out_shape=jax.ShapeDtypeStruct((B_pad, O_pad), jnp.float32),
        grid=(B_pad // TB,),
        in_specs=[
            pl.BlockSpec((TB, s_pad, E), lambda b: (b, 0, 0)),   # x: batch-tiled
            pl.BlockSpec(wc.shape, resident3),                   # weights resident
            pl.BlockSpec(packed["bc"].shape, resident2),
            pl.BlockSpec(w1.shape, resident2),
            pl.BlockSpec(packed["b1"].shape, resident2),
            pl.BlockSpec(w2.shape, resident2),
            pl.BlockSpec(packed["b2"].shape, resident2),
        ],
        out_specs=pl.BlockSpec((TB, O_pad), lambda b: (b, 0)),
        compiler_params=pltpu.CompilerParams(
            dimension_semantics=("parallel",),        # megacore over batch (v7x)
            vmem_limit_bytes=32 * 1024 * 1024),
    )(x, wc, packed["bc"], w1, packed["b1"], w2, packed["b2"])

    return out[:B, :output_size]


# ---------------------------------------------------------------------------
# Pure-JAX reference (PyTorch semantics, incl. channel-major flatten)
# ---------------------------------------------------------------------------
def reference_forward(params, token_ids, pooling_size):
    emb = params["embedding"][token_ids].astype(jnp.float32)
    B, S, E = emb.shape
    feats = []
    for w, b in zip(params["conv_w"], params["conv_b"]):
        KH, _, C_out = w.shape
        L = S - KH + 1
        conv = jnp.zeros((B, L, C_out), jnp.float32)
        for dh in range(KH):
            conv = conv + jnp.einsum("ble,ec->blc", emb[:, dh:dh + L, :], w[dh])
        act = jax.nn.relu(conv + b[0])
        pooled = []
        for i in range(pooling_size):
            s = (i * L) // pooling_size
            e = -((-(i + 1) * L) // pooling_size)
            pooled.append(jnp.max(act[:, s:e, :], axis=1))
        pooled = jnp.stack(pooled, axis=2)                   # (B, C_out, P)
        feats.append(pooled.reshape(B, -1))
    feats = jnp.concatenate(feats, axis=1)
    h = jax.nn.relu(feats @ params["w1"] + params["b1"][0])
    return h @ params["w2"] + params["b2"][0]


# ---------------------------------------------------------------------------
# Main
# ---------------------------------------------------------------------------
if __name__ == "__main__":
    # Module hyper-parameters (small, consistent with the forward pass).
    batch_size = 16              # 2 grid steps of TB=8 (exercises the batch grid)
    vocab_size = 50
    embedding_length = 32        # E
    num_seq = 16                 # S
    in_channels = 1
    out_channels = 8             # C_out
    kernel_heights = (2, 3, 4)
    stride = 1
    padding = 0
    pooling_size = 2             # P
    hidden_size = 32
    output_size = 4

    key = jax.random.PRNGKey(0)
    keys = jax.random.split(key, 12)

    feat_dim = len(kernel_heights) * out_channels * pooling_size

    params = {
        "embedding": 0.1 * jax.random.normal(
            keys[0], (vocab_size, embedding_length), jnp.float32),
        "conv_w": [
            0.1 * jax.random.normal(
                keys[1 + i], (kh, embedding_length, out_channels), jnp.float32)
            for i, kh in enumerate(kernel_heights)
        ],
        "conv_b": [
            0.1 * jax.random.normal(keys[4 + i], (1, out_channels), jnp.float32)
            for i in range(len(kernel_heights))
        ],
        "w1": 0.1 * jax.random.normal(keys[7], (feat_dim, hidden_size), jnp.float32),
        "b1": 0.1 * jax.random.normal(keys[8], (1, hidden_size), jnp.float32),
        "w2": 0.1 * jax.random.normal(keys[9], (hidden_size, output_size), jnp.float32),
        "b2": 0.1 * jax.random.normal(keys[10], (1, output_size), jnp.float32),
    }

    token_ids = jax.random.randint(
        keys[11], (batch_size, num_seq), 0, vocab_size, dtype=jnp.int32)

    packed = pack_params(params, kernel_heights, pooling_size)
    ref = jax.block_until_ready(reference_forward(params, token_ids, pooling_size))

    # 1) f32 path: tight numeric check of the packing / pooling / fusion logic.
    logits_f32 = jax.block_until_ready(cnn_forward(
        packed, token_ids,
        kernel_heights=kernel_heights, pooling_size=pooling_size,
        output_size=output_size, compute_dtype=jnp.float32))
    assert logits_f32.shape == (batch_size, output_size)
    assert jnp.allclose(logits_f32, ref, atol=1e-3, rtol=1e-3), (logits_f32, ref)

    # 2) bf16 path (production default): looser tolerance for bf16 rounding.
    logits_bf16 = jax.block_until_ready(cnn_forward(
        packed, token_ids,
        kernel_heights=kernel_heights, pooling_size=pooling_size,
        output_size=output_size, compute_dtype=jnp.bfloat16))
    assert logits_bf16.shape == (batch_size, output_size)
    assert jnp.allclose(logits_bf16, ref, atol=5e-2, rtol=5e-2), (logits_bf16, ref)

    print("KERNEL_OK")
</pallas_src>

<mosaic_0001>
module attributes {stable_mosaic.version = 11 : i64} {
  func.func @kernel(%arg0: i32, %arg1: memref<8x19x32xf32, #tpu.memory_space<vmem>>, %arg2: memref<4x32x128xf32, #tpu.memory_space<vmem>>, %arg3: memref<1x128xf32, #tpu.memory_space<vmem>>, %arg4: memref<768x128xf32, #tpu.memory_space<vmem>>, %arg5: memref<1x128xf32, #tpu.memory_space<vmem>>, %arg6: memref<128x128xf32, #tpu.memory_space<vmem>>, %arg7: memref<1x128xf32, #tpu.memory_space<vmem>>, %arg8: memref<8x128xf32, #tpu.memory_space<vmem>>) attributes {dimension_semantics = [#tpu.dimension_semantics<parallel>], iteration_bounds = array<i64: 2>, scalar_prefetch = 0 : i64, scratch_operands = 0 : i64, tpu.core_type = #tpu.core_type<tc>, window_params = [{transform_indices = @transform_0, window_bounds = array<i64: 8, 19, 32>}, {pipeline_mode = #tpu.pipeline_mode<synchronous>, transform_indices = @transform_1, window_bounds = array<i64: 4, 32, 128>}, {pipeline_mode = #tpu.pipeline_mode<synchronous>, transform_indices = @transform_2, window_bounds = array<i64: 1, 128>}, {pipeline_mode = #tpu.pipeline_mode<synchronous>, transform_indices = @transform_3, window_bounds = array<i64: 768, 128>}, {pipeline_mode = #tpu.pipeline_mode<synchronous>, transform_indices = @transform_4, window_bounds = array<i64: 1, 128>}, {pipeline_mode = #tpu.pipeline_mode<synchronous>, transform_indices = @transform_5, window_bounds = array<i64: 128, 128>}, {pipeline_mode = #tpu.pipeline_mode<synchronous>, transform_indices = @transform_6, window_bounds = array<i64: 1, 128>}, {transform_indices = @transform_7, window_bounds = array<i64: 8, 128>}]} {
    %c0 = arith.constant 0 : index
    %c0_0 = arith.constant 0 : index
    %c0_1 = arith.constant 0 : index
    %0 = vector.load %arg1[%c0, %c0_0, %c0_1] : memref<8x19x32xf32, #tpu.memory_space<vmem>>, vector<8x19x32xf32>
    %1 = vector.extract_strided_slice %0 {offsets = [0, 0, 0], sizes = [8, 16, 32], strides = [1, 1, 1]} : vector<8x19x32xf32> to vector<8x16x32xf32>
    %2 = vector.shape_cast %1 : vector<8x16x32xf32> to vector<128x32xf32>
    %c0_2 = arith.constant 0 : index
    %c0_3 = arith.constant 0 : index
    %c0_4 = arith.constant 0 : index
    %3 = vector.load %arg2[%c0_2, %c0_3, %c0_4] : memref<4x32x128xf32, #tpu.memory_space<vmem>>, vector<1x32x128xf32>
    %4 = vector.shape_cast %3 : vector<1x32x128xf32> to vector<32x128xf32>
    %cst = arith.constant dense<0.000000e+00> : vector<128x128xf32>
    %5 = tpu.matmul %2, %4, %cst {dimension_numbers = #tpu.dot_dimension_numbers<[1], [0], [0], [1], [0, 0, 1, 1], [], []>} : vector<128x32xf32>, vector<32x128xf32>, vector<128x128xf32> -> vector<128x128xf32>
    %6 = vector.extract_strided_slice %0 {offsets = [0, 1, 0], sizes = [8, 16, 32], strides = [1, 1, 1]} : vector<8x19x32xf32> to vector<8x16x32xf32>
    %7 = vector.shape_cast %6 : vector<8x16x32xf32> to vector<128x32xf32>
    %c1 = arith.constant 1 : index
    %c0_5 = arith.constant 0 : index
    %c0_6 = arith.constant 0 : index
    %8 = vector.load %arg2[%c1, %c0_5, %c0_6] : memref<4x32x128xf32, #tpu.memory_space<vmem>>, vector<1x32x128xf32>
    %9 = vector.shape_cast %8 : vector<1x32x128xf32> to vector<32x128xf32>
    %cst_7 = arith.constant dense<0.000000e+00> : vector<128x128xf32>
    %10 = tpu.matmul %7, %9, %cst_7 {dimension_numbers = #tpu.dot_dimension_numbers<[1], [0], [0], [1], [0, 0, 1, 1], [], []>} : vector<128x32xf32>, vector<32x128xf32>, vector<128x128xf32> -> vector<128x128xf32>
    %11 = arith.addf %5, %10 : vector<128x128xf32>
    %12 = vector.extract_strided_slice %0 {offsets = [0, 2, 0], sizes = [8, 16, 32], strides = [1, 1, 1]} : vector<8x19x32xf32> to vector<8x16x32xf32>
    %13 = vector.shape_cast %12 : vector<8x16x32xf32> to vector<128x32xf32>
    %c2 = arith.constant 2 : index
    %c0_8 = arith.constant 0 : index
    %c0_9 = arith.constant 0 : index
    %14 = vector.load %arg2[%c2, %c0_8, %c0_9] : memref<4x32x128xf32, #tpu.memory_space<vmem>>, vector<1x32x128xf32>
    %15 = vector.shape_cast %14 : vector<1x32x128xf32> to vector<32x128xf32>
    %cst_10 = arith.constant dense<0.000000e+00> : vector<128x128xf32>
    %16 = tpu.matmul %13, %15, %cst_10 {dimension_numbers = #tpu.dot_dimension_numbers<[1], [0], [0], [1], [0, 0, 1, 1], [], []>} : vector<128x32xf32>, vector<32x128xf32>, vector<128x128xf32> -> vector<128x128xf32>
    %17 = arith.addf %11, %16 : vector<128x128xf32>
    %18 = vector.extract_strided_slice %0 {offsets = [0, 3, 0], sizes = [8, 16, 32], strides = [1, 1, 1]} : vector<8x19x32xf32> to vector<8x16x32xf32>
    %19 = vector.shape_cast %18 : vector<8x16x32xf32> to vector<128x32xf32>
    %c3 = arith.constant 3 : index
    %c0_11 = arith.constant 0 : index
    %c0_12 = arith.constant 0 : index
    %20 = vector.load %arg2[%c3, %c0_11, %c0_12] : memref<4x32x128xf32, #tpu.memory_space<vmem>>, vector<1x32x128xf32>
    %21 = vector.shape_cast %20 : vector<1x32x128xf32> to vector<32x128xf32>
    %cst_13 = arith.constant dense<0.000000e+00> : vector<128x128xf32>
    %22 = tpu.matmul %19, %21, %cst_13 {dimension_numbers = #tpu.dot_dimension_numbers<[1], [0], [0], [1], [0, 0, 1, 1], [], []>} : vector<128x32xf32>, vector<32x128xf32>, vector<128x128xf32> -> vector<128x128xf32>
    %23 = arith.addf %17, %22 : vector<128x128xf32>
    %c0_14 = arith.constant 0 : index
    %c0_15 = arith.constant 0 : index
    %24 = vector.load %arg3[%c0_14, %c0_15] : memref<1x128xf32, #tpu.memory_space<vmem>>, vector<1x128xf32>
    %25 = vector.broadcast %24 : vector<1x128xf32> to vector<128x128xf32>
    %26 = arith.addf %23, %25 : vector<128x128xf32>
    %cst_16 = arith.constant 0.000000e+00 : f32
    %27 = vector.broadcast %cst_16 : f32 to vector<128x128xf32>
    %28 = arith.maximumf %26, %27 : vector<128x128xf32>
    %29 = vector.shape_cast %28 : vector<128x128xf32> to vector<8x16x128xf32>
    %30 = vector.extract_strided_slice %29 {offsets = [0, 0, 0], sizes = [8, 8, 128], strides = [1, 1, 1]} : vector<8x16x128xf32> to vector<8x8x128xf32>
    %cst_17 = arith.constant dense<0xFF800000> : vector<8x128xf32>
    %31 = vector.multi_reduction <maximumf>, %30, %cst_17 [1] : vector<8x8x128xf32> to vector<8x128xf32>
    %32 = vector.extract_strided_slice %29 {offsets = [0, 7, 0], sizes = [8, 8, 128], strides = [1, 1, 1]} : vector<8x16x128xf32> to vector<8x8x128xf32>
    %cst_18 = arith.constant dense<0xFF800000> : vector<8x128xf32>
    %33 = vector.multi_reduction <maximumf>, %32, %cst_18 [1] : vector<8x8x128xf32> to vector<8x128xf32>
    %34 = vector.extract_strided_slice %29 {offsets = [0, 0, 0], sizes = [8, 7, 128], strides = [1, 1, 1]} : vector<8x16x128xf32> to vector<8x7x128xf32>
    %cst_19 = arith.constant dense<0xFF800000> : vector<8x128xf32>
    %35 = vector.multi_reduction <maximumf>, %34, %cst_19 [1] : vector<8x7x128xf32> to vector<8x128xf32>
    %36 = vector.extract_strided_slice %29 {offsets = [0, 7, 0], sizes = [8, 7, 128], strides = [1, 1, 1]} : vector<8x16x128xf32> to vector<8x7x128xf32>
    %cst_20 = arith.constant dense<0xFF800000> : vector<8x128xf32>
    %37 = vector.multi_reduction <maximumf>, %36, %cst_20 [1] : vector<8x7x128xf32> to vector<8x128xf32>
    %38 = vector.extract_strided_slice %29 {offsets = [0, 0, 0], sizes = [8, 7, 128], strides = [1, 1, 1]} : vector<8x16x128xf32> to vector<8x7x128xf32>
    %cst_21 = arith.constant dense<0xFF800000> : vector<8x128xf32>
    %39 = vector.multi_reduction <maximumf>, %38, %cst_21 [1] : vector<8x7x128xf32> to vector<8x128xf32>
    %40 = vector.extract_strided_slice %29 {offsets = [0, 6, 0], sizes = [8, 7, 128], strides = [1, 1, 1]} : vector<8x16x128xf32> to vector<8x7x128xf32>
    %cst_22 = arith.constant dense<0xFF800000> : vector<8x128xf32>
    %41 = vector.multi_reduction <maximumf>, %40, %cst_22 [1] : vector<8x7x128xf32> to vector<8x128xf32>
    %42 = tpu.concatenate %31, %33, %35, %37, %39, %41 in 1 : vector<8x128xf32>, vector<8x128xf32>, vector<8x128xf32>, vector<8x128xf32>, vector<8x128xf32>, vector<8x128xf32> -> vector<8x768xf32>
    %c0_23 = arith.constant 0 : index
    %c0_24 = arith.constant 0 : index
    %43 = vector.load %arg4[%c0_23, %c0_24] : memref<768x128xf32, #tpu.memory_space<vmem>>, vector<768x128xf32>
    %cst_25 = arith.constant dense<0.000000e+00> : vector<8x128xf32>
    %44 = tpu.matmul %42, %43, %cst_25 {dimension_numbers = #tpu.dot_dimension_numbers<[1], [0], [0], [1], [0, 0, 1, 1], [], []>} : vector<8x768xf32>, vector<768x128xf32>, vector<8x128xf32> -> vector<8x128xf32>
    %c0_26 = arith.constant 0 : index
    %c0_27 = arith.constant 0 : index
    %45 = vector.load %arg5[%c0_26, %c0_27] : memref<1x128xf32, #tpu.memory_space<vmem>>, vector<1x128xf32>
    %46 = vector.broadcast %45 : vector<1x128xf32> to vector<8x128xf32>
    %47 = arith.addf %44, %46 : vector<8x128xf32>
    %cst_28 = arith.constant 0.000000e+00 : f32
    %48 = vector.broadcast %cst_28 : f32 to vector<8x128xf32>
    %49 = arith.maximumf %47, %48 : vector<8x128xf32>
    %c0_29 = arith.constant 0 : index
    %c0_30 = arith.constant 0 : index
    %50 = vector.load %arg6[%c0_29, %c0_30] : memref<128x128xf32, #tpu.memory_space<vmem>>, vector<128x128xf32>
    %cst_31 = arith.constant dense<0.000000e+00> : vector<8x128xf32>
    %51 = tpu.matmul %49, %50, %cst_31 {dimension_numbers = #tpu.dot_dimension_numbers<[1], [0], [0], [1], [0, 0, 1, 1], [], []>} : vector<8x128xf32>, vector<128x128xf32>, vector<8x128xf32> -> vector<8x128xf32>
    %c0_32 = arith.constant 0 : index
    %c0_33 = arith.constant 0 : index
    %52 = vector.load %arg7[%c0_32, %c0_33] : memref<1x128xf32, #tpu.memory_space<vmem>>, vector<1x128xf32>
    %53 = vector.broadcast %52 : vector<1x128xf32> to vector<8x128xf32>
    %54 = arith.addf %51, %53 : vector<8x128xf32>
    %c0_34 = arith.constant 0 : index
    %c0_35 = arith.constant 0 : index
    %55 = vector.load %arg8[%c0_34, %c0_35] : memref<8x128xf32, #tpu.memory_space<vmem>>, vector<8x128xf32>
    tpu.vector_store %arg8[%c0_34, %c0_35], %54 {strides = array<i32>} : memref<8x128xf32, #tpu.memory_space<vmem>>, vector<8x128xf32>,
    return
  }
  func.func @transform_0(%arg0: i32) -> (i32, i32, i32) {
    %c0_i32 = arith.constant 0 : i32
    %c0_i32_0 = arith.constant 0 : i32
    %c0_i32_1 = arith.constant 0 : i32
    return %arg0, %c0_i32, %c0_i32_0 : i32, i32, i32
  }
  func.func @transform_1(%arg0: i32) -> (i32, i32, i32) {
    %c0_i32 = arith.constant 0 : i32
    %c0_i32_0 = arith.constant 0 : i32
    %c0_i32_1 = arith.constant 0 : i32
    %c0_i32_2 = arith.constant 0 : i32
    return %c0_i32, %c0_i32_0, %c0_i32_1 : i32, i32, i32
  }
  func.func @transform_2(%arg0: i32) -> (i32, i32) {
    %c0_i32 = arith.constant 0 : i32
    %c0_i32_0 = arith.constant 0 : i32
    %c0_i32_1 = arith.constant 0 : i32
    return %c0_i32, %c0_i32_0 : i32, i32
  }
  func.func @transform_3(%arg0: i32) -> (i32, i32) {
    %c0_i32 = arith.constant 0 : i32
    %c0_i32_0 = arith.constant 0 : i32
    %c0_i32_1 = arith.constant 0 : i32
    return %c0_i32, %c0_i32_0 : i32, i32
  }
  func.func @transform_4(%arg0: i32) -> (i32, i32) {
    %c0_i32 = arith.constant 0 : i32
    %c0_i32_0 = arith.constant 0 : i32
    %c0_i32_1 = arith.constant 0 : i32
    return %c0_i32, %c0_i32_0 : i32, i32
  }
  func.func @transform_5(%arg0: i32) -> (i32, i32) {
    %c0_i32 = arith.constant 0 : i32
    %c0_i32_0 = arith.constant 0 : i32
    %c0_i32_1 = arith.constant 0 : i32
    return %c0_i32, %c0_i32_0 : i32, i32
  }
  func.func @transform_6(%arg0: i32) -> (i32, i32) {
    %c0_i32 = arith.constant 0 : i32
    %c0_i32_0 = arith.constant 0 : i32
    %c0_i32_1 = arith.constant 0 : i32
    return %c0_i32, %c0_i32_0 : i32, i32
  }
  func.func @transform_7(%arg0: i32) -> (i32, i32) {
    %c0_i32 = arith.constant 0 : i32
    %c0_i32_0 = arith.constant 0 : i32
    return %arg0, %c0_i32 : i32, i32
  }
}

</mosaic_0001>

<bundles_post_ra>
// kernel: tpu_custom_call.1
= control target key start
LH: loop header
LB: loop body
LE: loop exit
PB: predicated region body
PF: predicated region fallthrough
CT: control target
= control target key end

     0   :  { %12 = vsyncpa [#allocation3], 0  ;;  %s4039_s0 = inlined_call_operand.vmem [shape: f32[16,19,32], index: 0, kind: input, shape index: {}]   ;;  %s4040_s1 = inlined_call_operand.vmem [shape: f32[4,32,128], index: 1, kind: input, shape index: {}]   ;;  %s4041_s2 = inlined_call_operand.vmem [shape: f32[1,128], index: 2, kind: input, shape index: {}]   ;;  %s4042_s3 = inlined_call_operand.hbm [shape: f32[768,128], index: 3, kind: input, shape index: {}]   ;;  %s4043_s4 = inlined_call_operand.vmem [shape: f32[1,128], index: 4, kind: input, shape index: {}]   ;;  %s4044_s5 = inlined_call_operand.vmem [shape: f32[128,128], index: 5, kind: input, shape index: {}]   ;;  %s4045_s6 = inlined_call_operand.vmem [shape: f32[1,128], index: 6, kind: input, shape index: {}]   ;;  %s4046_s7 = inlined_call_operand.hbm [shape: f32[16,128], index: 7, kind: output, shape index: {}]  }
   0x1   :  { %13 = vsyncpa [#allocation4], 0 }
   0x2   :  { %15 = vsyncpa [#allocation4 + $0x1], 0  ;;  %s3016_s24 = smov 0   ;;  %s3018_s25 = smov 0  }
   0x3   :  { %s3020_s26 = smov 0   ;;  %s3022_s27 = smov 0  }
   0x4 LB: > { %s3037_s28 = sadd.s32 4294967295, %s2967_s27   ;;  %s2160_s29 = sadd.s32 4294967294, %s2967_s27   ;;  %s2967_s27 = sphi %s3022_s27, %s4135_s27   ;;  %s2963_s26 = sphi %s3020_s26, %s4134_s26   ;;  %s2959_s25 = sphi %s3018_s25, %s4133_s25   ;;  %s2955_s24 = sphi %s3016_s24, %s4132_s24  }
   0x5   : > { %s3041_s30 = sadd.s32 1, %s2967_s27   ;;  %s180_s8 = sadd.s32 1, %s2963_s26 }
   0x6   : > { %s177_s9 = ssub.s32 %s2967_s27, %s3041_s30  ;;  %p190_p0 = scmp.ne.s32.totalorder %s2963_s26, %s2959_s25 }
   0x7   : > { %p178_p1 = scmp.eq.s32.totalorder %s177_s9, 0  ;;  %p191_p2 = scmp.eq.s32.totalorder %s3037_s28, 1 }
   0x8   : > { %p196_p3 = scmp.ne.s32.totalorder %s2959_s25, %s2955_s24  ;;  %p197_p4 = scmp.eq.s32.totalorder %s2160_s29, 1 }
   0x9   : > { %s3052_s10 = scalar_select %p178_p1, %s2963_s26, %s180_s8  }
   0xa   : > { %p3054_p5 = por %p191_p2, %p190_p0  ;;  %p3058_p6 = por %p197_p4, %p196_p3 }
   0xb   : > { %p2161_p7 = scmp.ge.s32.totalorder %s2967_s27, 1  ;;  %p204_p8 = scmp.lt.s32.totalorder %s2967_s27, 3 }
   0xc   : > { %s4066_s11 = scalar_select %p3054_p5, 1, 0 }
   0xd   : > { %s4067_s12 = scalar_select %p3058_p6, 1, 0 }
   0xe   : > { %p4047_p9 = scmp.eq.s32.totalorder %s3037_s28, 0  ;;  %p3065_p10 = pnand %p2161_p7, %p204_p8 }
   0xf   : > { %s2969_s14 = smov [#allocation2]   ;;  %s2873_s19 = scalar_lea.hbm %s4042_s3, 12288 }
  0x10   : > { %s4068_s13 = scalar_select %p3065_p10, 1, 0 }
  0x11   : > { %s222_s15 = sshll.u32 %s2969_s14, 4  ;;  %p2824_p11 = pneg %p3065_p10  ;;  %s223_s15 = int_to_ptr.vmem [resolvable:$true] %s222_s15 }
  0x12   : > { %p2874_p13 = scmp.ne.s32.totalorder %s4042_s3, %s2873_s19  ;;  %p2880_p3 = scmp.lt.u32.totalorder %s2873_s19, %s4042_s3 }
  0x13   : > { %p3073_p12 = pnand %p4047_p9, %p2824_p11 }
  0x15   : > { %p2875_p0 = pneg %p3073_p12 }
  0x17   : > { %p2876_p1 = pnand %p2875_p0, %p2874_p13 }
  0x19   : > { %p2877_p2 = pneg %p2876_p1 }
  0x1b   : > { %p2882_p4 = pnand %p2880_p3, %p2877_p2 }
  0x1d   : > { %2885 = shalt.err (!%p2882_p4)
}
  0x1e   : > { %s2886_s29 = scalar_lea.vmem %s223_s15, 12288  ;;  %p2894_p9 = scmp.lt.s32.totalorder %s223_s15, %s223_s15 }
  0x1f   : > { %p2887_p7 = scmp.ne.s32.totalorder %s223_s15, %s2886_s29  ;;  %p2895_p6 = scmp.lt.s32.totalorder %s2886_s29, %s2886_s29 }
  0x21   : > { %p2889_p8 = pnand %p2887_p7, %p2875_p0  ;;  %p2896_p5 = por %p2895_p6, %p2894_p9 }
  0x23   : > { %p2890_p11 = pneg %p2889_p8 }
  0x25   : > { %p2897_p10 = pnand %p2896_p5, %p2890_p11 }
  0x27   : > { %2900 = shalt.err (!%p2897_p10)
}
  0x28   : > { %s2970_s8 = smov 128   ;;  %s2971_s9 = smov 8  }
  0x29   : > { %2827 = dma.hbm_to_vmem [thread:$0]  (!%p3073_p12), %s4042_s3, 12288, %s223_s15, [#allocation3], %s2970_s8, %s2970_s8, %s2971_s9  }
  0x2a   : > { %p4070_p13 = scmp.ne.s32.totalorder %s4068_s13, 0 }
  0x2c   : > { %257 = sbr.rel (%p4070_p13) target bundleno = 965 (0x3c5), region = 48 }
  0x33   : > { %p4071_p1 = scmp.eq.s32.totalorder %s3037_s28, 0 }
  0x35   : > { %2946 = dma.done.wait (%p4071_p1), [#allocation3], 12288   ;;  %p4072_p0 = pmov %p4071_p1 }
  0x36   : > { %s2167_s18 = sshll.u32 %s3037_s28, 3  ;;  %v2169_v0 = vld [vmem:[%s4040_s1 + $0x20] sm:$0xff]  ;;  %v2170_v1 = vld [vmem:[%s4040_s1 + $0x28] sm:$0xff]  ;;  %v2171_v2 = vld [vmem:[%s4040_s1 + $0x30] sm:$0xff]  ;;  %vm349_vm0 = vcmask 1046528   ;;  %vm395_vm1 = vcmask 261120  }
  0x37   : > { %2948 = vsyncadd (%p4072_p0), [#allocation3], 4294955008  ;;  %p291_p5 = scmp.lt.s32.totalorder %s2167_s18, 15  ;;  %v2617_v3 = vpack.c.bf16 %v2170_v1, %v2169_v0  ;;  %v2172_v4 = vld [vmem:[%s4040_s1 + $0x38] sm:$0xff]  ;;  %v321_v11 = vld [vmem:[%s4040_s1] sm:$0xff]  ;;  %vm750_vm2 = vcmask 1045504  }
  0x38   : > { %v2621_v7 = vpack.c.bf16 %v2172_v4, %v2171_v2  ;;  %v322_v12 = vld [vmem:[%s4040_s1 + $0x8] sm:$0xff]  ;;  %v323_v39 = vld [vmem:[%s4040_s1 + $0x10] sm:$0xff]  ;;  %v324_v44 = vld [vmem:[%s4040_s1 + $0x18] sm:$0xff]  ;;  %vm989_vm3 = vcmask 1044480   ;;  %vm1315_vm4 = vcmask 1047559   ;;  %vm1508_vm5 = vcmask 1047558  }
  0x39   : > { %s4137_s18 = smov (!%p291_p5, %s2167_s18), 15  ;;  %2618 = vmatprep.subr.bf16.mxu0 %v2617_v3  ;;  %v2625_v24 = vpack.c.bf16 %v322_v12, %v321_v11  ;;  %v2629_v48 = vpack.c.bf16 %v324_v44, %v323_v39  ;;  %v2205_v2 = vld [vmem:[%s4040_s1 + $0x40] sm:$0xff]  ;;  %vm1589_vm6 = vcmask 1041409   ;;  %vm1591_vm7 = vcmask 1042434   ;;  %s287_s16 = sand.u32 1, %s2959_s25  }
  0x3a   : > { %s2817_s19 = smul.u32 24, %s4137_s18  ;;  %2620 = vmatpush3.bf16.msra.mxu0 %v2617_v3  ;;  %vm1593_vm8 = vcmask 1043459   ;;  %vm1595_vm9 = vcmask 1044484   ;;  %vm1597_vm10 = vcmask 1045509   ;;  %vm1599_vm11 = vcmask 1046534   ;;  %s2166_s21 = sshll.u32 %s287_s16, 3 }
  0x3b   : > { %2622 = vmatprep.subr.bf16.mxu0 %v2621_v7  ;;  %vm2973_vm12 = vmmov 0   ;;  %s2249_s22 = sshll.u32 %s3037_s28, 7  ;;  %s289_s23 = scalar_lea.vmem [#allocation5], %s2166_s21 }
  0x3c   : > { %s3112_s8 = scalar_lea.vmem %s4039_s0, %s2817_s19  ;;  %s2089_s29 = sshll.u32 %s289_s23, 4  ;;  %s3999_s29 = int_to_ptr.vmem [resolvable:$true] %s2089_s29 }
  0x3d   : > { %v3118_v5 = vld [vmem:[%s3112_s8] sm:$0xff]  ;;  %v3121_v6 = vld [vmem:[%s3112_s8 + $0x8] sm:$0xff]  ;;  %v3126_v10 = vld [vmem:[%s3112_s8 + $0x10] sm:$0x7]  ;;  %s3997_s14 = scalar_lea.hbm %s4046_s7, %s2249_s22  ;;  %s2076_s17 = scalar_lea.sflag [#allocation4], %s287_s16 }
  0x3e   : > { %v350_v8 = vrot.slane %v3118_v5, 1  ;;  %v351_v9 = vrot.slane %v3121_v6, 1  ;;  %v353_v13 = vrot.slane %v3126_v10, 1  ;;  %v754_v14 = vrot.slane %v3126_v10, 2  ;;  %v3137_v15 = vld [vmem:[%s3112_s8 + $0x18] sm:$0xff]  ;;  %v3140_v16 = vld [vmem:[%s3112_s8 + $0x20] sm:$0xff]  ;;  %2624 = vmatpush3.bf16.msra.mxu0 %v2621_v7 }
  0x3f   : > { %v3143_v17 = vld [vmem:[%s3112_s8 + $0x30] sm:$0xff]  ;;  %v993_v19 = vrot.slane %v3126_v10, 3  ;;  %v355_v20 = vrot.slane %v3137_v15, 1  ;;  %v356_v21 = vrot.slane %v3140_v16, 1  ;;  %v3150_v22 = vld [vmem:[%s3112_s8 + $0x28] sm:$0x7]  ;;  %2626 = vmatprep.subr.bf16.mxu0 %v2625_v24 }
  0x40   : > { %v352_v18 = vsel %vm349_vm0, %v350_v8, %v351_v9  ;;  %v3153_v23 = vld [vmem:[%s3112_s8 + $0x38] sm:$0xff]  ;;  %v358_v25 = vrot.slane %v3150_v22, 1  ;;  %v360_v26 = vrot.slane %v3143_v17, 1  ;;  %v3159_v27 = vld [vmem:[%s3112_s8 + $0x40] sm:$0x7]  ;;  %v3162_v28 = vld [vmem:[%s3112_s8 + $0x48] sm:$0xff]  ;;  %v354_v40 = vsel %vm349_vm0, %v351_v9, %v353_v13 }
  0x41   : > { %2462 = vmatprep.mubr.msk.f32.mxu0 %vm395_vm1, %v352_v18  ;;  %v3165_v29 = vld [vmem:[%s3112_s8 + $0x50] sm:$0xff]  ;;  %v361_v30 = vrot.slane %v3153_v23, 1  ;;  %v363_v31 = vrot.slane %v3159_v27, 1  ;;  %v365_v32 = vrot.slane %v3162_v28, 1  ;;  %v3171_v33 = vld [vmem:[%s3112_s8 + $0x58] sm:$0x7]  ;;  %v357_v47 = vsel %vm349_vm0, %v355_v20, %v356_v21 }
  0x42   : > { %v3174_v34 = vld [vmem:[%s3112_s8 + $0x60] sm:$0xff]  ;;  %v366_v35 = vrot.slane %v3165_v29, 1  ;;  %v368_v36 = vrot.slane %v3171_v33, 1  ;;  %v3179_v37 = vld [vmem:[%s3112_s8 + $0x68] sm:$0xff]  ;;  %v3182_v38 = vld [vmem:[%s3112_s8 + $0x70] sm:$0x7]  ;;  %v359_v54 = vsel %vm349_vm0, %v356_v21, %v358_v25  ;;  %2463 = vmatmul.mubr.msk.f32.vlgmr.msra.gmra.mrb[0].mxu0 %vm395_vm1, %v354_v40 }
  0x43   : > { %v370_v41 = vrot.slane %v3174_v34, 1  ;;  %v371_v42 = vrot.slane %v3179_v37, 1  ;;  %v373_v43 = vrot.slane %v3182_v38, 1  ;;  %v3195_v45 = vld [vmem:[%s3112_s8 + $0x78] sm:$0xff]  ;;  %v3198_v46 = vld [vmem:[%s3112_s8 + $0x80] sm:$0xff]  ;;  %v3207_v52 = vld [vmem:[%s3112_s8 + $0x90] sm:$0xff]  ;;  %v362_v55 = vsel %vm349_vm0, %v360_v26, %v361_v30  ;;  %2628 = vmatpush3.bf16.msra.mxu0 %v2625_v24  ;;  %2465 = vmatprep.mubr.msk.f32.mxu0 %vm395_vm1, %v357_v47 }
  0x44   : > { %v375_v49 = vrot.slane %v3195_v45, 1  ;;  %v376_v50 = vrot.slane %v3198_v46, 1  ;;  %v3204_v51 = vld [vmem:[%s3112_s8 + $0x88] sm:$0x7]  ;;  %v3210_v53 = vld [vmem:[%s3112_s8 + $0x98] sm:$0xff]  ;;  %v380_v57 = vrot.slane %v3207_v52, 1  ;;  %v364_v60 = vsel %vm349_vm0, %v361_v30, %v363_v31  ;;  %2630 = vmatprep.subr.bf16.mxu0 %v2629_v48 }
  0x45   : > { %v378_v56 = vrot.slane %v3204_v51, 1  ;;  %v3217_v58 = vld [vmem:[%s3112_s8 + $0xa0] sm:$0x7]  ;;  %v3220_v59 = vld [vmem:[%s3112_s8 + $0xa8] sm:$0xff]  ;;  %v367_v61 = vsel %vm349_vm0, %v365_v32, %v366_v35  ;;  %v369_v62 = vsel %vm349_vm0, %v366_v35, %v368_v36  ;;  %v381_v63 = vrot.slane %v3210_v53, 1  ;;  %v3228_v0 = vld [vmem:[%s3112_s8 + $0xb0] sm:$0xff] }
  0x46   : > { %v3231_v1 = vld [vmem:[%s3112_s8 + $0xb8] sm:$0x7]  ;;  %v372_v3 = vsel %vm349_vm0, %v370_v41, %v371_v42  ;;  %v3239_v4 = vsel %vm349_vm0, %v371_v42, %v373_v43  ;;  %v3242_v7 = vsel %vm349_vm0, %v375_v49, %v376_v50  ;;  %v2206_v8 = vld [vmem:[%s4040_s1 + $0x48] sm:$0xff]  ;;  %v751_v9 = vrot.slane %v3118_v5, 2  ;;  %2466 = vmatmul.mubr.msk.f32.gmra.mrb[2].mxu0 %vm395_vm1, %v359_v54  ;;  %s2901_s18 = scalar_lea.vmem %s3999_s29, 128  ;;  %p4130_p9 = scmp.ne.s32.totalorder %s4066_s11, 0 }
  0x47   : > { %v3249_v11 = vsel %vm349_vm0, %v376_v50, %v378_v56  ;;  %v383_v12 = vrot.slane %v3217_v58, 1  ;;  %v385_v13 = vrot.slane %v3220_v59, 1  ;;  %v3253_v18 = vpack.c.bf16 %v2206_v8, %v2205_v2  ;;  %2468 = vmatprep.mubr.msk.f32.mxu0 %vm395_vm1, %v362_v55  ;;  %2632 = vmatpush3.bf16.msra.mxu0 %v2629_v48  ;;  %p2902_p6 = scmp.ne.s32.totalorder %s3999_s29, %s2901_s18  ;;  %s2975_s28 = smov [#allocation5]  }
  0x48   : > { %v3256_v20 = vsel %vm349_vm0, %v380_v57, %v381_v63  ;;  %v386_v21 = vrot.slane %v3228_v0, 1  ;;  %v388_v24 = vrot.slane %v3231_v1, 1  ;;  %v752_v25 = vrot.slane %v3121_v6, 2  ;;  %s2905_s19 = sshll.u32 %s2975_s28, 4  ;;  %s2906_s19 = int_to_ptr.vmem [resolvable:$false] %s2905_s19 }
  0x49   : > { %v756_v26 = vrot.slane %v3137_v15, 2  ;;  %v757_v30 = vrot.slane %v3140_v16, 2  ;;  %v759_v31 = vrot.slane %v3150_v22, 2  ;;  %v761_v32 = vrot.slane %v3143_v17, 2  ;;  %2634 = vmatprep.subr.bf16.mxu0 %v3253_v18  ;;  %p2903_p10 = pnand %p2902_p6, %p4130_p9  ;;  %s2907_s20 = scalar_lea.vmem %s2906_s19, 256 }
  0x4a   : > { %v3268_v35 = vsel %vm750_vm2, %v751_v9, %v752_v25  ;;  %v3273_v36 = vsel %vm750_vm2, %v752_v25, %v754_v14  ;;  %v762_v39 = vrot.slane %v3153_v23, 2  ;;  %v764_v40 = vrot.slane %v3159_v27, 2  ;;  %2469 = vmatmul.mubr.msk.f32.gmra.mrb[4].mxu0 %vm395_vm1, %v364_v60  ;;  %p2908_p2 = scmp.lt.s32.totalorder %s3999_s29, %s2906_s19  ;;  %p2909_p3 = scmp.lt.s32.totalorder %s2907_s20, %s2901_s18 }
  0x4b   : > { %v3279_v41 = vsel %vm750_vm2, %v756_v26, %v757_v30  ;;  %v3282_v42 = vsel %vm750_vm2, %v757_v30, %v759_v31  ;;  %v766_v43 = vrot.slane %v3162_v28, 2  ;;  %v767_v44 = vrot.slane %v3165_v29, 2  ;;  %2471 = vmatprep.mubr.msk.f32.mxu0 %vm395_vm1, %v367_v61  ;;  %p2904_p12 = pneg %p2903_p10 }
  0x4c   : > { %v3287_v47 = vsel %vm750_vm2, %v761_v32, %v762_v39  ;;  %v3290_v14 = vsel %vm750_vm2, %v762_v39, %v764_v40  ;;  %v769_v48 = vrot.slane %v3171_v33, 2  ;;  %v771_v49 = vrot.slane %v3174_v34, 2  ;;  %p2910_p4 = por %p2909_p3, %p2908_p2 }
  0x4d   : > { %v3296_v50 = vsel %vm349_vm0, %v381_v63, %v383_v12  ;;  %v3299_v54 = vsel %vm750_vm2, %v766_v43, %v767_v44  ;;  %v772_v55 = vrot.slane %v3179_v37, 2  ;;  %v774_v56 = vrot.slane %v3182_v38, 2 }
  0x4e   : > { %v3305_v57 = vsel %vm750_vm2, %v767_v44, %v769_v48  ;;  %v776_v2 = vrot.slane %v3195_v45, 2  ;;  %v777_v8 = vrot.slane %v3198_v46, 2  ;;  %v779_v60 = vrot.slane %v3204_v51, 2  ;;  %2472 = vmatmul.mubr.msk.f32.gmra.mrb[6].mxu0 %vm395_vm1, %v369_v62  ;;  %p2911_p7 = pnand %p2910_p4, %p2904_p12 }
  0x4f   : > { %v3311_v63 = vsel %vm750_vm2, %v771_v49, %v772_v55  ;;  %v3314_v9 = vsel %vm750_vm2, %v772_v55, %v774_v56  ;;  %v781_v12 = vrot.slane %v3207_v52, 2  ;;  %v782_v25 = vrot.slane %v3210_v53, 2  ;;  %2474 = vmatprep.mubr.msk.f32.mxu0 %vm395_vm1, %v372_v3 }
  0x50   : > { %v3319_v61 = vsel %vm750_vm2, %v776_v2, %v777_v8  ;;  %v3322_v26 = vsel %vm750_vm2, %v777_v8, %v779_v60  ;;  %v784_v30 = vrot.slane %v3217_v58, 2  ;;  %v786_v31 = vrot.slane %v3220_v59, 2 }
  0x51   : > { %v3328_v32 = vsel %vm750_vm2, %v781_v12, %v782_v25  ;;  %v787_v39 = vrot.slane %v3228_v0, 2  ;;  %v789_v40 = vrot.slane %v3231_v1, 2  ;;  %v990_v43 = vrot.slane %v3118_v5, 3 }
  0x52   : > { %v3335_v44 = vsel %vm750_vm2, %v782_v25, %v784_v30  ;;  %v991_v48 = vrot.slane %v3121_v6, 3  ;;  %v995_v49 = vrot.slane %v3137_v15, 3  ;;  %v996_v62 = vrot.slane %v3140_v16, 3  ;;  %2475 = vmatmul.mubr.msk.f32.gmra.mrb[8].mxu0 %vm395_vm1, %v3239_v4 }
  0x53   : > { %v3341_v55 = vsel %vm750_vm2, %v786_v31, %v787_v39  ;;  %v3344_v56 = vsel %vm750_vm2, %v787_v39, %v789_v40  ;;  %v998_v2 = vrot.slane %v3150_v22, 3  ;;  %v1000_v8 = vrot.slane %v3143_v17, 3  ;;  %2477 = vmatprep.mubr.msk.f32.mxu0 %vm395_vm1, %v3242_v7 }
  0x54   : > { %v3349_v3 = vsel %vm989_vm3, %v990_v43, %v991_v48  ;;  %v3354_v60 = vsel %vm989_vm3, %v991_v48, %v993_v19  ;;  %v3357_v12 = vsel %vm989_vm3, %v995_v49, %v996_v62  ;;  %v1001_v25 = vrot.slane %v3153_v23, 3 }
  0x55   : > { %v3363_v22 = vsel %vm989_vm3, %v996_v62, %v998_v2  ;;  %v1003_v30 = vrot.slane %v3159_v27, 3  ;;  %v1005_v31 = vrot.slane %v3162_v28, 3  ;;  %v1006_v10 = vrot.slane %v3165_v29, 3 }
  0x56   : > { %v3371_v19 = vsel %vm989_vm3, %v1000_v8, %v1001_v25  ;;  %v1008_v39 = vrot.slane %v3171_v33, 3  ;;  %v1010_v40 = vrot.slane %v3174_v34, 3  ;;  %v1011_v4 = vrot.slane %v3179_v37, 3  ;;  %2478 = vmatmul.mubr.msk.f32.gmra.mrb[10].mxu0 %vm395_vm1, %v3249_v11 }
  0x57   : > { %v3377_v43 = vsel %vm989_vm3, %v1001_v25, %v1003_v30  ;;  %v3380_v27 = vsel %vm989_vm3, %v1005_v31, %v1006_v10  ;;  %v1013_v48 = vrot.slane %v3182_v38, 3  ;;  %v1015_v49 = vrot.slane %v3195_v45, 3  ;;  %2480 = vmatprep.mubr.msk.f32.mxu0 %vm395_vm1, %v3256_v20 }
  0x58   : > { %v3385_v7 = vsel %vm989_vm3, %v1006_v10, %v1008_v39  ;;  %v3388_v62 = vsel %vm989_vm3, %v1010_v40, %v1011_v4  ;;  %v1016_v33 = vrot.slane %v3198_v46, 3  ;;  %v1018_v2 = vrot.slane %v3204_v51, 3 }
  0x59   : > { %v3395_v8 = vsel %vm989_vm3, %v1011_v4, %v1013_v48  ;;  %v1020_v38 = vrot.slane %v3207_v52, 3  ;;  %v1021_v25 = vrot.slane %v3210_v53, 3  ;;  %v1023_v30 = vrot.slane %v3217_v58, 3 }
  0x5a   : > { %v3403_v31 = vsel %vm989_vm3, %v1015_v49, %v1016_v33  ;;  %v3406_v51 = vsel %vm989_vm3, %v1016_v33, %v1018_v2  ;;  %v1025_v11 = vrot.slane %v3220_v59, 3  ;;  %v1026_v10 = vrot.slane %v3228_v0, 3  ;;  %2481 = vmatmul.mubr.msk.f32.gmra.mrb[12].mxu0 %vm395_vm1, %v3296_v50  ;;  %v2207_v49 = vld [vmem:[%s4040_s1 + $0x50] sm:$0xff]  ;;  %v2208_v33 = vld [vmem:[%s4040_s1 + $0x58] sm:$0xff]  ;;  %v1679_v2 = vld [vmem:[#allocation2 + $0x60] sm:$0xff] }
  0x5b   : > { %v387_v39 = vsel %vm349_vm0, %v385_v13, %v386_v21  ;;  %v3416_v58 = vsel %vm989_vm3, %v1020_v38, %v1021_v25  ;;  %v3419_v20 = vsel %vm989_vm3, %v1021_v25, %v1023_v30  ;;  %v1028_v40 = vrot.slane %v3231_v1, 3  ;;  %v2225_v1 = vld [vmem:[%s4040_s1 + $0x60] sm:$0xff]  ;;  %v1697_v38 = vld [vmem:[#allocation2 + $0xf0] sm:$0xff]  ;;  %v1698_v25 = vld [vmem:[#allocation2 + $0xf8] sm:$0xff] }
  0x5c   : > { %v3423_v4 = vsel %vm989_vm3, %v1025_v11, %v1026_v10  ;;  %2483 = vmatprep.mubr.msk.f32.mxu0 %vm395_vm1, %v387_v39  ;;  %v389_v13 = vsel %vm349_vm0, %v386_v21, %v388_v24  ;;  %v2637_v50 = vpack.c.bf16 %v2208_v33, %v2207_v49  ;;  %v2226_v21 = vld [vmem:[%s4040_s1 + $0x68] sm:$0xff]  ;;  %v1682_v11 = vld [vmem:[#allocation2 + $0x78] sm:$0xff]  ;;  %v1715_v39 = vld [vmem:[#allocation2 + $0x180] sm:$0xff] }
  0x5d   : > { %v3428_v48 = vsel %vm989_vm3, %v1026_v10, %v1028_v40  ;;  %v2641_v24 = vpack.c.bf16 %v2226_v21, %v2225_v1  ;;  %v3555_v40 = vld [vmem:[%s4041_s2] ss:$0 sm:$0xff]  ;;  %v3563_v49 = vld [vmem:[#allocation2 + $0x198] sm:$0xff]  ;;  %v3565_v33 = vld [vmem:[#allocation2 + $0x110] sm:$0xff] }
  0x5e   : > { %2484 = vmatmul.mubr.msk.f32.gmra.mrb[14].mxu0 %vm395_vm1, %v389_v13  ;;  %v3561_v13 = vld [vmem:[#allocation2 + $0x190] sm:$0xff]  ;;  %v3569_v1 = vld [vmem:[#allocation2 + $0x1a0] sm:$0xff]  ;;  %v3571_v21 = vld [vmem:[#allocation2 + $0x1a8] sm:$0xff] }
  0x5f   : > { %2494 = vmatprep.mubr.msk.f32.mxu0 %vm395_vm1, %v3118_v5  ;;  %v2227_v5 = vld [vmem:[%s4040_s1 + $0x70] sm:$0xff] }
  0x62   : > { %2495 = vmatmul.mubr.msk.f32.vlgmr.msra.gmra.mrb[0].mxu0 %vm395_vm1, %v3121_v6  ;;  %v2228_v6 = vld [vmem:[%s4040_s1 + $0x78] sm:$0xff] }
  0x63   : > { %2636 = vmatpush3.bf16.msra.mxu0 %v3253_v18  ;;  %2497 = vmatprep.mubr.msk.f32.mxu0 %vm395_vm1, %v3137_v15  ;;  %v2645_v15 = vpack.c.bf16 %v2228_v6, %v2227_v5  ;;  %v1688_v18 = vld [vmem:[#allocation2 + $0xa8] sm:$0xff]  ;;  %v3577_v6 = vld [vmem:[#allocation2 + $0x1b0] sm:$0xff] }
  0x64   : > { %2638 = vmatprep.subr.bf16.mxu0 %v2637_v50  ;;  %v3575_v5 = vld [vmem:[#allocation2 + $0x128] sm:$0xff]  ;;  %4073 = vst [vmem:[#allocation8_spill] sm:$0xff] %v3577_v6 }
  0x66   : > { %2498 = vmatmul.mubr.msk.f32.gmra.mrb[2].mxu0 %vm395_vm1, %v3140_v16  ;;  %v1683_v16 = vld [vmem:[#allocation2 + $0x80] sm:$0xff] }
  0x67   : > { %2500 = vmatprep.mubr.msk.f32.mxu0 %vm395_vm1, %v3143_v17  ;;  %2640 = vmatpush3.bf16.msra.mxu0 %v2637_v50  ;;  %v1684_v17 = vld [vmem:[#allocation2 + $0x88] sm:$0xff]  ;;  %v3567_v50 = vld [vmem:[#allocation2 + $0x118] sm:$0xff] }
  0x68   : > { %2642 = vmatprep.subr.bf16.mxu0 %v2641_v24 }
  0x6a   : > { %2501 = vmatmul.mubr.msk.f32.gmra.mrb[4].mxu0 %vm395_vm1, %v3153_v23  ;;  %v2649_v23 = vpack.c.bf16 %v1684_v17, %v1683_v16  ;;  %v3581_v17 = vld [vmem:[#allocation2 + $0x130] sm:$0xff] }
  0x6b   : > { %2503 = vmatprep.mubr.msk.f32.mxu0 %vm395_vm1, %v3162_v28  ;;  %v1667_v28 = vld [vmem:[#allocation2] sm:$0xff]  ;;  %4075 = vst [vmem:[#allocation10_spill] sm:$0xff] %v3581_v17 }
  0x6c   : > { %2650 = vmatprep.subr.bf16.mxu1 %v2649_v23  ;;  %v3583_v23 = vld [vmem:[#allocation2 + $0x138] sm:$0xff] }
  0x6d   : > { %4076 = vst [vmem:[#allocation11_spill] sm:$0xff] %v3583_v23 }
  0x6e   : > { %2504 = vmatmul.mubr.msk.f32.gmra.mrb[6].mxu0 %vm395_vm1, %v3165_v29  ;;  %v1668_v29 = vld [vmem:[#allocation2 + $0x8] sm:$0xff] }
  0x6f   : > { %2506 = vmatprep.mubr.msk.f32.mxu0 %vm395_vm1, %v3174_v34  ;;  %v2651_v34 = vpack.c.bf16 %v1668_v29, %v1667_v28  ;;  %v3585_v28 = vld [vmem:[#allocation2 + $0x1c0] sm:$0xff] }
  0x70   : > { %4077 = vst [vmem:[#allocation12_spill] sm:$0xff] %v3585_v28 }
  0x71   : > { %2652 = vmatpush3.bf16.msra.mxu1 %v2651_v34 }
  0x72   : > { %2507 = vmatmul.mubr.msk.f32.gmra.mrb[8].mxu0 %vm395_vm1, %v3179_v37  ;;  %v1685_v37 = vld [vmem:[#allocation2 + $0x90] sm:$0xff] }
  0x73   : > { %2509 = vmatprep.mubr.msk.f32.mxu0 %vm395_vm1, %v3195_v45  ;;  %v1686_v45 = vld [vmem:[#allocation2 + $0x98] sm:$0xff] }
  0x76   : > { %2510 = vmatmul.mubr.msk.f32.gmra.mrb[10].mxu0 %vm395_vm1, %v3198_v46  ;;  %v2653_v46 = vpack.c.bf16 %v1686_v45, %v1685_v37  ;;  %v3588_v37 = vld [vmem:[#allocation2 + $0x1c8] sm:$0xff]  ;;  %v3590_v45 = vld [vmem:[#allocation2 + $0x140] sm:$0xff] }
  0x77   : > { %2512 = vmatprep.mubr.msk.f32.mxu0 %vm395_vm1, %v3207_v52  ;;  %v1669_v52 = vld [vmem:[#allocation2 + $0x10] sm:$0xff]  ;;  %4078 = vst [vmem:[#allocation13_spill] sm:$0xff] %v3588_v37  ;;  %4079 = vst [vmem:[#allocation14_spill] sm:$0xff] %v3590_v45 }
  0x78   : > { %2654 = vmatprep.subr.bf16.mxu1 %v2653_v46  ;;  %v3592_v46 = vld [vmem:[#allocation2 + $0x148] sm:$0xff] }
  0x79   : > { %4080 = vst [vmem:[#allocation15_spill] sm:$0xff] %v3592_v46 }
  0x7a   : > { %2513 = vmatmul.mubr.msk.f32.gmra.mrb[12].mxu0 %vm395_vm1, %v3210_v53  ;;  %v1670_v53 = vld [vmem:[#allocation2 + $0x18] sm:$0xff] }
  0x7b   : > { %2515 = vmatprep.mubr.msk.f32.mxu0 %vm395_vm1, %v3220_v59  ;;  %v2655_v59 = vpack.c.bf16 %v1670_v53, %v1669_v52 }
  0x7d   : > { %2656 = vmatpush3.bf16.msra.mxu1 %v2655_v59 }
  0x7e   : > { %2516 = vmatmul.mubr.msk.f32.gmra.mrb[14].mxu0 %vm395_vm1, %v3228_v0  ;;  %v1687_v0 = vld [vmem:[#allocation2 + $0xa0] sm:$0xff] }
  0x7f   : > { %2526 = vmatprep.mubr.msk.f32.mxu0 %vm395_vm1, %v3268_v35  ;;  %v2657_v35 = vpack.c.bf16 %v1688_v18, %v1687_v0 }
  0x81   : > { %2658 = vmatprep.subr.bf16.mxu1 %v2657_v35 }
  0x82   : > { %2527 = vmatmul.mubr.msk.f32.vlgmr.msra.gmra.mrb[0].mxu0 %vm395_vm1, %v3273_v36  ;;  %v1671_v36 = vld [vmem:[#allocation2 + $0x20] sm:$0xff] }
  0x83   : > { %2644 = vmatpush3.bf16.msra.mxu0 %v2641_v24  ;;  %2529 = vmatprep.mubr.msk.f32.mxu0 %vm395_vm1, %v3279_v41  ;;  %v1672_v41 = vld [vmem:[#allocation2 + $0x28] sm:$0xff]  ;;  %v3573_v24 = vld [vmem:[#allocation2 + $0x120] sm:$0xff] }
  0x84   : > { %2646 = vmatprep.subr.bf16.mxu0 %v2645_v15 }
  0x86   : > { %2530 = vmatmul.mubr.msk.f32.gmra.mrb[2].mxu0 %vm395_vm1, %v3282_v42  ;;  %v2659_v42 = vpack.c.bf16 %v1672_v41, %v1671_v36 }
  0x87   : > { %2532 = vmatprep.mubr.msk.f32.mxu0 %vm395_vm1, %v3287_v47  ;;  %2648 = vmatpush3.bf16.msra.mxu0 %v2645_v15  ;;  %v1689_v47 = vld [vmem:[#allocation2 + $0xb0] sm:$0xff]  ;;  %v3579_v15 = vld [vmem:[#allocation2 + $0x1b8] sm:$0xff] }
  0x88   : > { %2660 = vmatpush3.bf16.msra.mxu1 %v2659_v42  ;;  %4074 = vst [vmem:[#allocation9_spill] sm:$0xff] %v3579_v15 }
  0x8a   : > { %2533 = vmatmul.mubr.msk.f32.gmra.mrb[4].mxu0 %vm395_vm1, %v3290_v14  ;;  %v1690_v14 = vld [vmem:[#allocation2 + $0xb8] sm:$0xff] }
  0x8b   : > { %2535 = vmatprep.mubr.msk.f32.mxu0 %vm395_vm1, %v3299_v54  ;;  %v2661_v54 = vpack.c.bf16 %v1690_v14, %v1689_v47 }
  0x8d   : > { %2662 = vmatprep.subr.bf16.mxu1 %v2661_v54 }
  0x8e   : > { %2536 = vmatmul.mubr.msk.f32.gmra.mrb[6].mxu0 %vm395_vm1, %v3305_v57  ;;  %v1673_v57 = vld [vmem:[#allocation2 + $0x30] sm:$0xff] }
  0x8f   : > { %2538 = vmatprep.mubr.msk.f32.mxu0 %vm395_vm1, %v3311_v63  ;;  %v1674_v63 = vld [vmem:[#allocation2 + $0x38] sm:$0xff] }
  0x92   : > { %2539 = vmatmul.mubr.msk.f32.gmra.mrb[8].mxu0 %vm395_vm1, %v3314_v9  ;;  %v2663_v9 = vpack.c.bf16 %v1674_v63, %v1673_v57 }
  0x93   : > { %2541 = vmatprep.mubr.msk.f32.mxu0 %vm395_vm1, %v3319_v61  ;;  %v1691_v61 = vld [vmem:[#allocation2 + $0xc0] sm:$0xff] }
  0x94   : > { %2664 = vmatpush3.bf16.msra.mxu1 %v2663_v9 }
  0x96   : > { %2542 = vmatmul.mubr.msk.f32.gmra.mrb[10].mxu0 %vm395_vm1, %v3322_v26  ;;  %v1692_v26 = vld [vmem:[#allocation2 + $0xc8] sm:$0xff] }
  0x97   : > { %2544 = vmatprep.mubr.msk.f32.mxu0 %vm395_vm1, %v3328_v32  ;;  %v1675_v32 = vld [vmem:[#allocation2 + $0x40] sm:$0xff] }
  0x9a   : > { %2545 = vmatmul.mubr.msk.f32.gmra.mrb[12].mxu0 %vm395_vm1, %v3335_v44  ;;  %v2665_v44 = vpack.c.bf16 %v1692_v26, %v1691_v61 }
  0x9b   : > { %2547 = vmatprep.mubr.msk.f32.mxu0 %vm395_vm1, %v3341_v55  ;;  %v1676_v55 = vld [vmem:[#allocation2 + $0x48] sm:$0xff] }
  0x9c   : > { %2666 = vmatprep.subr.bf16.mxu1 %v2665_v44  ;;  %v3617_v44 = vld [vmem:[#allocation2 + $0x1d0] sm:$0xff] }
  0x9d   : > { %4081 = vst [vmem:[#allocation16_spill] sm:$0xff] %v3617_v44 }
  0x9e   : > { %2548 = vmatmul.mubr.msk.f32.gmra.mrb[14].mxu0 %vm395_vm1, %v3344_v56  ;;  %v1693_v56 = vld [vmem:[#allocation2 + $0xd0] sm:$0xff] }
  0x9f   : > { %2558 = vmatprep.mubr.msk.f32.mxu0 %vm395_vm1, %v3349_v3  ;;  %v1694_v3 = vld [vmem:[#allocation2 + $0xd8] sm:$0xff] }
  0xa2   : > { %2559 = vmatmul.mubr.msk.f32.vlgmr.msra.gmra.mrb[0].mxu0 %vm395_vm1, %v3354_v60  ;;  %v2667_v60 = vpack.c.bf16 %v1676_v55, %v1675_v32  ;;  %v3619_v55 = vld [vmem:[#allocation2 + $0x1d8] sm:$0xff] }
  0xa3   : > { %2561 = vmatprep.mubr.msk.f32.mxu0 %vm395_vm1, %v3357_v12  ;;  %v2669_v12 = vpack.c.bf16 %v1694_v3, %v1693_v56  ;;  %4082 = vst [vmem:[#allocation17_spill] sm:$0xff] %v3619_v55 }
  0xa4   : > { %2668 = vmatpush3.bf16.msra.mxu1 %v2667_v60 }
  0xa5   : > { %2670 = vmatprep.subr.bf16.mxu1 %v2669_v12 }
  0xa6   : > { %2562 = vmatmul.mubr.msk.f32.gmra.mrb[2].mxu0 %vm395_vm1, %v3363_v22  ;;  %v1677_v22 = vld [vmem:[#allocation2 + $0x50] sm:$0xff] }
  0xa7   : > { %2564 = vmatprep.mubr.msk.f32.mxu0 %vm395_vm1, %v3371_v19  ;;  %v1678_v19 = vld [vmem:[#allocation2 + $0x58] sm:$0xff] }
  0xaa   : > { %2565 = vmatmul.mubr.msk.f32.gmra.mrb[4].mxu0 %vm395_vm1, %v3377_v43  ;;  %v1695_v43 = vld [vmem:[#allocation2 + $0xe0] sm:$0xff] }
  0xab   : > { %2567 = vmatprep.mubr.msk.f32.mxu0 %vm395_vm1, %v3380_v27  ;;  %v1696_v27 = vld [vmem:[#allocation2 + $0xe8] sm:$0xff] }
  0xae   : > { %2568 = vmatmul.mubr.msk.f32.gmra.mrb[6].mxu0 %vm395_vm1, %v3385_v7  ;;  %v2671_v7 = vpack.c.bf16 %v1678_v19, %v1677_v22 }
  0xaf   : > { %2570 = vmatprep.mubr.msk.f32.mxu0 %vm395_vm1, %v3388_v62  ;;  %v2673_v62 = vpack.c.bf16 %v1696_v27, %v1695_v43 }
  0xb0   : > { %2672 = vmatpush3.bf16.msra.mxu1 %v2671_v7 }
  0xb1   : > { %2674 = vmatprep.subr.bf16.mxu1 %v2673_v62 }
  0xb2   : > { %2571 = vmatmul.mubr.msk.f32.gmra.mrb[8].mxu0 %vm395_vm1, %v3395_v8  ;;  %v1680_v8 = vld [vmem:[#allocation2 + $0x68] sm:$0xff] }
  0xb3   : > { %2573 = vmatprep.mubr.msk.f32.mxu0 %vm395_vm1, %v3403_v31  ;;  %v2675_v30 = vpack.c.bf16 %v1680_v8, %v1679_v2  ;;  %v2677_v31 = vpack.c.bf16 %v1698_v25, %v1697_v38 }
  0xb5   : > { %2676 = vmatpush3.bf16.msra.mxu1 %v2675_v30 }
  0xb6   : > { %2574 = vmatmul.mubr.msk.f32.gmra.mrb[10].mxu0 %vm395_vm1, %v3406_v51  ;;  %v1681_v51 = vld [vmem:[#allocation2 + $0x70] sm:$0xff]  ;;  %2678 = vmatprep.subr.bf16.mxu1 %v2677_v31 }
  0xb7   : > { %2576 = vmatprep.mubr.msk.f32.mxu0 %vm395_vm1, %v3416_v58  ;;  %v2679_v10 = vpack.c.bf16 %v1682_v11, %v1681_v51  ;;  %v1716_v58 = vld [vmem:[#allocation2 + $0x188] sm:$0xff] }
  0xb9   : > { %2680 = vmatpush3.bf16.msra.mxu1 %v2679_v10 }
  0xba   : > { %2577 = vmatmul.mubr.msk.f32.gmra.mrb[12].mxu0 %vm395_vm1, %v3419_v20  ;;  %v2681_v20 = vpack.c.bf16 %v1716_v58, %v1715_v39 }
  0xbb   : > { %2579 = vmatprep.mubr.msk.f32.mxu0 %vm395_vm1, %v3423_v4  ;;  %v3557_v4 = vld [vmem:[#allocation2 + $0x100] sm:$0xff] }
  0xbc   : > { %2682 = vmatprep.subr.bf16.mxu1 %v2681_v20 }
  0xbe   : > { %2580 = vmatmul.mubr.msk.f32.gmra.mrb[14].mxu0 %vm395_vm1, %v3428_v48  ;;  %v3559_v48 = vld [vmem:[#allocation2 + $0x108] sm:$0xff] }
 0x175   : > { %v2560_v16 = vpop.f32.mrb[0].mxu0 }
 0x176   : > { %v1236_v29 = vadd.f32 %v2560_v16, %v3555_v40  ;;  %v1133_v34 = vpop.f32.mrb[1].mxu0 }
 0x177   : > { %v1235_v52 = vadd.f32 %v3555_v40, %v1133_v34 }
 0x178   : > { %v1252_v18 = vmax.f32 %v1236_v29, 0.0 }
 0x179   : > { %v1251_v42 = vmax.f32 %v1235_v52, 0.0  ;;  %v2563_v47 = vpop.f32.mrb[2].mxu0 }
 0x17a   : > { %v1317_v63 = vsel %vm349_vm0, %v1252_v18, -inf  ;;  %v1444_v9 = vsel %vm750_vm2, %v1252_v18, -inf  ;;  %v1510_v61 = vsel %vm989_vm3, %v1252_v18, -inf  ;;  %v1238_v26 = vadd.f32 %v2563_v47, %v3555_v40  ;;  %v1143_v32 = vpop.f32.mrb[3].mxu0 }
 0x17b   : > { %v1267_v56 = vrot.slane %v1251_v42, 4  ;;  %v1316_v3 = vsel %vm1315_vm4, %v1251_v42, -inf  ;;  %v1388_v60 = vsel %vm349_vm0, %v1251_v42, -inf  ;;  %v1509_v12 = vsel %vm1508_vm5, %v1251_v42, -inf }
 0x17c   : > { %v1318_v22 = vmax.f32 %v1316_v3, %v1317_v63  ;;  %v1389_v19 = vrot.slane %v1388_v60, 4  ;;  %v1445_v43 = vmax.f32 %v1316_v3, %v1444_v9  ;;  %v1511_v27 = vmax.f32 %v1509_v12, %v1510_v61 }
 0x17d   : > { %v1268_v7 = vmax.f32 %v1251_v42, %v1267_v56  ;;  %v1254_v62 = vmax.f32 %v1238_v26, 0.0  ;;  %v1237_v2 = vadd.f32 %v3555_v40, %v1143_v32  ;;  %v2566_v8 = vpop.f32.mrb[4].mxu0 }
 0x17e   : > { %v1319_v25 = vrot.slane %v1318_v22, 4  ;;  %v1390_v30 = vmax.f32 %v1388_v60, %v1389_v19  ;;  %v1446_v31 = vrot.slane %v1445_v43, 4  ;;  %v1512_v51 = vrot.slane %v1511_v27, 4  ;;  %v1153_v11 = vpop.f32.mrb[5].mxu0 }
 0x17f   : > { %v1269_v10 = vrot.slane %v1268_v7, 2  ;;  %v1326_v39 = vsel %vm349_vm0, %v1254_v62, -inf  ;;  %v1452_v58 = vsel %vm750_vm2, %v1254_v62, -inf  ;;  %v1519_v20 = vsel %vm989_vm3, %v1254_v62, -inf }
 0x180   : > { %v1320_v16 = vmax.f32 %v1318_v22, %v1319_v25  ;;  %v1391_v29 = vrot.slane %v1390_v30, 2  ;;  %v1447_v34 = vmax.f32 %v1445_v43, %v1446_v31  ;;  %v1513_v52 = vmax.f32 %v1511_v27, %v1512_v51 }
 0x181   : > { %v1270_v18 = vmax.f32 %v1268_v7, %v1269_v10  ;;  %v1253_v42 = vmax.f32 %v1237_v2, 0.0  ;;  %v1240_v47 = vadd.f32 %v2566_v8, %v3555_v40  ;;  %v1239_v63 = vadd.f32 %v3555_v40, %v1153_v11  ;;  %v2569_v9 = vpop.f32.mrb[6].mxu0 }
 0x182   : > { %v1321_v61 = vrot.slane %v1320_v16, 2  ;;  %v1392_v26 = vmax.f32 %v1390_v30, %v1391_v29  ;;  %v1448_v32 = vrot.slane %v1447_v34, 2  ;;  %v1514_v56 = vrot.slane %v1513_v52, 2  ;;  %v3632_v3 = vpop.f32.mrb[7].mxu0 }
 0x183   : > { %v1271_v60 = vrot.slane %v1270_v18, 1  ;;  %v1273_v12 = vrot.slane %v1253_v42, 4  ;;  %v1325_v22 = vsel %vm1315_vm4, %v1253_v42, -inf  ;;  %v1395_v19 = vsel %vm349_vm0, %v1253_v42, -inf }
 0x184   : > { %v3636_v43 = vmax.f32 %v1320_v16, %v1321_v61  ;;  %v1393_v27 = vrot.slane %v1392_v26, 1  ;;  %v3638_v7 = vmax.f32 %v1447_v34, %v1448_v32  ;;  %v3640_v62 = vmax.f32 %v1513_v52, %v1514_v56 }
 0x185   : > { %v3642_v2 = vmax.f32 %v1270_v18, %v1271_v60  ;;  %v1274_v8 = vmax.f32 %v1253_v42, %v1273_v12  ;;  %v1327_v25 = vmax.f32 %v1325_v22, %v1326_v39  ;;  %v1396_v30 = vrot.slane %v1395_v19, 4  ;;  %v3644_v31 = vpop.f32.mrb[8].mxu0 }
 0x186   : > { %v3646_v51 = vmax.f32 %v1392_v26, %v1393_v27  ;;  %v1453_v16 = vmax.f32 %v1325_v22, %v1452_v58  ;;  %v3650_v29 = vpop.f32.mrb[9].mxu0  ;;  %v1518_v18 = vsel %vm1508_vm5, %v1253_v42, -inf  ;;  %v1256_v39 = vmax.f32 %v1240_v47, 0.0 }
 0x187   : > { %v1275_v34 = vrot.slane %v1274_v8, 2  ;;  %v1328_v61 = vrot.slane %v1327_v25, 4  ;;  %v1397_v52 = vmax.f32 %v1395_v19, %v1396_v30  ;;  %v1520_v56 = vmax.f32 %v1518_v18, %v1519_v20 }
 0x188   : > { %v1454_v32 = vrot.slane %v1453_v16, 4  ;;  %v1255_v60 = vmax.f32 %v1239_v63, 0.0  ;;  %v1242_v27 = vadd.f32 %v2569_v9, %v3555_v40  ;;  %v1335_v58 = vsel %vm349_vm0, %v1256_v39, -inf }
 0x189   : > { %v1276_v12 = vmax.f32 %v1274_v8, %v1275_v34  ;;  %v1329_v38 = vmax.f32 %v1327_v25, %v1328_v61  ;;  %v1398_v26 = vrot.slane %v1397_v52, 2  ;;  %v2575_v57 = vpop.f32.mrb[10].mxu0  ;;  %v1521_v14 = vrot.slane %v1520_v56, 4 }
 0x18a   : > { %v1455_v54 = vmax.f32 %v1453_v16, %v1454_v32  ;;  %v1460_v22 = vsel %vm750_vm2, %v1256_v39, -inf  ;;  %v1183_v41 = vpop.f32.mrb[11].mxu0  ;;  %v1528_v20 = vsel %vm989_vm3, %v1256_v39, -inf  ;;  %v1279_v8 = vrot.slane %v1255_v60, 4 }
 0x18b   : > { %v1277_v19 = vrot.slane %v1276_v12, 1  ;;  %v1330_v30 = vrot.slane %v1329_v38, 2  ;;  %v1399_v42 = vmax.f32 %v1397_v52, %v1398_v26  ;;  %v1522_v63 = vmax.f32 %v1520_v56, %v1521_v14 }
 0x18c   : > { %v1456_v47 = vrot.slane %v1455_v54, 2  ;;  %v1334_v25 = vsel %vm1315_vm4, %v1255_v60, -inf  ;;  %v1280_v35 = vmax.f32 %v1255_v60, %v1279_v8  ;;  %v1402_v52 = vsel %vm349_vm0, %v1255_v60, -inf }
 0x18d   : > { %v3658_v34 = vmax.f32 %v1276_v12, %v1277_v19  ;;  %v3660_v9 = vmax.f32 %v1329_v38, %v1330_v30  ;;  %v1400_v16 = vrot.slane %v1399_v42, 1  ;;  %v1336_v61 = vmax.f32 %v1334_v25, %v1335_v58  ;;  %v3662_v18 = vpop.f32.mrb[12].mxu0 }
 0x18e   : > { %v3664_v32 = vmax.f32 %v1455_v54, %v1456_v47  ;;  %v1523_v36 = vrot.slane %v1522_v63, 2  ;;  %v3667_v39 = vpop.f32.mrb[13].mxu0  ;;  %v1403_v26 = vrot.slane %v1402_v52, 4  ;;  %v1461_v12 = vmax.f32 %v1334_v25, %v1460_v22 }
 0x18f   : > { %v3669_v14 = vmax.f32 %v1399_v42, %v1400_v16  ;;  %v1337_v56 = vrot.slane %v1336_v61, 4  ;;  %v1281_v58 = vrot.slane %v1280_v35, 2  ;;  %v1527_v30 = vsel %vm1508_vm5, %v1255_v60, -inf }
 0x190   : > { %v3672_v19 = vmax.f32 %v1522_v63, %v1523_v36  ;;  %v1404_v47 = vmax.f32 %v1402_v52, %v1403_v26  ;;  %v1462_v8 = vrot.slane %v1461_v12, 4  ;;  %v1529_v10 = vmax.f32 %v1527_v30, %v1528_v20 }
 0x191   : > { %v3675_v54 = vmax.f32 %v1336_v61, %v1337_v56  ;;  %v3677_v0 = vpop.f32.mrb[14].mxu0  ;;  %v3680_v16 = vmax.f32 %v1280_v35, %v1281_v58  ;;  %v1258_v59 = vmax.f32 %v1242_v27, 0.0  ;;  %v1241_v22 = vadd.f32 %v3555_v40, %v3632_v3 }
 0x192   : > { %v3684_v36 = vpop.f32.mrb[15].mxu0  ;;  %v1405_v60 = vrot.slane %v1404_v47, 2  ;;  %v1463_v25 = vmax.f32 %v1461_v12, %v1462_v8  ;;  %v1530_v61 = vrot.slane %v1529_v10, 4  ;;  %v1244_v3 = vadd.f32 %v3644_v31, %v3555_v40 }
 0x193   : > { %v1344_v20 = vsel %vm349_vm0, %v1258_v59, -inf  ;;  %v1468_v56 = vsel %vm750_vm2, %v1258_v59, -inf  ;;  %v1537_v35 = vsel %vm989_vm3, %v1258_v59, -inf  ;;  %v1257_v30 = vmax.f32 %v1241_v22, 0.0 }
 0x194   : > { %v1406_v26 = vmax.f32 %v1404_v47, %v1405_v60  ;;  %v1464_v27 = vrot.slane %v1463_v25, 2  ;;  %v1531_v58 = vmax.f32 %v1529_v10, %v1530_v61  ;;  %v1243_v42 = vadd.f32 %v3555_v40, %v3650_v29 }
 0x195   : > { %v1246_v12 = vadd.f32 %v2575_v57, %v3555_v40  ;;  %v1245_v8 = vadd.f32 %v3555_v40, %v1183_v41  ;;  %v1285_v52 = vrot.slane %v1257_v30, 4  ;;  %v1343_v59 = vsel %vm1315_vm4, %v1257_v30, -inf }
 0x196   : > { %v1407_v53 = vrot.slane %v1406_v26, 1  ;;  %v3697_v38 = vmax.f32 %v1463_v25, %v1464_v27  ;;  %v1532_v11 = vrot.slane %v1531_v58, 2  ;;  %v1409_v10 = vsel %vm349_vm0, %v1257_v30, -inf }
 0x197   : > { %v1536_v47 = vsel %vm1508_vm5, %v1257_v30, -inf  ;;  %v1260_v22 = vmax.f32 %v1244_v3, 0.0  ;;  %v1286_v29 = vmax.f32 %v1257_v30, %v1285_v52  ;;  %v1345_v57 = vmax.f32 %v1343_v59, %v1344_v20 }
 0x198   : > { %v3702_v31 = vmax.f32 %v1406_v26, %v1407_v53  ;;  %v3704_v60 = vmax.f32 %v1531_v58, %v1532_v11  ;;  %v1410_v61 = vrot.slane %v1409_v10, 4  ;;  %v1469_v41 = vmax.f32 %v1343_v59, %v1468_v56 }
 0x199   : > { %v1538_v63 = vmax.f32 %v1536_v47, %v1537_v35  ;;  %v1353_v25 = vsel %vm349_vm0, %v1260_v22, -inf  ;;  %v1287_v27 = vrot.slane %v1286_v29, 2  ;;  %v1346_v44 = vrot.slane %v1345_v57, 4 }
 0x19a   : > { %4083 = vst [vmem:[#allocation18_spill] sm:$0xff] %v3704_v60  ;;  %v1476_v55 = vsel %vm750_vm2, %v1260_v22, -inf  ;;  %v1546_v45 = vsel %vm989_vm3, %v1260_v22, -inf  ;;  %v1411_v46 = vmax.f32 %v1409_v10, %v1410_v61  ;;  %v1470_v28 = vrot.slane %v1469_v41, 4 }
 0x19b   : > { %v1539_v3 = vrot.slane %v1538_v63, 4  ;;  %v1259_v53 = vmax.f32 %v1243_v42, 0.0  ;;  %v3709_v26 = vmax.f32 %v1286_v29, %v1287_v27  ;;  %v3711_v11 = vmax.f32 %v1345_v57, %v1346_v44 }
 0x19c   : > { %v1262_v52 = vmax.f32 %v1246_v12, 0.0  ;;  %v1261_v20 = vmax.f32 %v1245_v8, 0.0  ;;  %v1412_v56 = vrot.slane %v1411_v46, 2  ;;  %v3713_v35 = vmax.f32 %v1469_v41, %v1470_v28 }
 0x19d   : > { %v3715_v58 = vmax.f32 %v1538_v63, %v1539_v3  ;;  %v1291_v30 = vrot.slane %v1259_v53, 4  ;;  %v1352_v59 = vsel %vm1315_vm4, %v1259_v53, -inf  ;;  %v1416_v47 = vsel %vm349_vm0, %v1259_v53, -inf }
 0x19e   : > { %v1545_v10 = vsel %vm1508_vm5, %v1259_v53, -inf  ;;  %v1362_v42 = vsel %vm349_vm0, %v1262_v52, -inf  ;;  %v3721_v22 = vmax.f32 %v1411_v46, %v1412_v56  ;;  %v1354_v28 = vmax.f32 %v1352_v59, %v1353_v25 }
 0x19f   : > { %4084 = vst [vmem:[#allocation19_spill] sm:$0xff] %v3715_v58  ;;  %v3725_v8 = vmax.f32 %v1259_v53, %v1291_v30  ;;  %v1417_v63 = vrot.slane %v1416_v47, 4  ;;  %v1477_v29 = vmax.f32 %v1352_v59, %v1476_v55  ;;  %v1547_v57 = vmax.f32 %v1545_v10, %v1546_v45 }
 0x1a0   : > { %v1484_v27 = vsel %vm750_vm2, %v1262_v52, -inf  ;;  %v1555_v3 = vsel %vm989_vm3, %v1262_v52, -inf  ;;  %v1355_v46 = vrot.slane %v1354_v28, 4  ;;  %v1297_v17 = vrot.slane %v1261_v20, 4 }
 0x1a1   : > { %v1418_v56 = vmax.f32 %v1416_v47, %v1417_v63  ;;  %v1478_v37 = vrot.slane %v1477_v29, 4  ;;  %v1548_v44 = vrot.slane %v1547_v57, 4  ;;  %v1361_v53 = vsel %vm1315_vm4, %v1261_v20, -inf }
 0x1a2   : > { %v1423_v25 = vsel %vm349_vm0, %v1261_v20, -inf  ;;  %v1554_v55 = vsel %vm1508_vm5, %v1261_v20, -inf  ;;  %v1363_v10 = vmax.f32 %v1361_v53, %v1362_v42  ;;  %v3738_v12 = vmax.f32 %v1261_v20, %v1297_v17 }
 0x1a3   : > { %v1419_v45 = vrot.slane %v1418_v56, 2  ;;  %v3734_v30 = vmax.f32 %v1477_v29, %v1478_v37  ;;  %v3736_v59 = vmax.f32 %v1547_v57, %v1548_v44  ;;  %v1424_v52 = vrot.slane %v1423_v25, 4 }
 0x1a4   : > { %v3740_v61 = vmax.f32 %v1361_v53, %v1484_v27  ;;  %v3742_v47 = vmax.f32 %v1554_v55, %v1555_v3  ;;  %v1248_v41 = vadd.f32 %v3662_v18, %v3555_v40  ;;  %v1247_v37 = vadd.f32 %v3555_v40, %v3667_v39 }
 0x1a5   : > { %4085 = vst [vmem:[#allocation20_spill] sm:$0xff] %v3736_v59  ;;  %v3744_v63 = vmax.f32 %v1418_v56, %v1419_v45  ;;  %v1250_v44 = vadd.f32 %v3677_v0, %v3555_v40  ;;  %v3752_v42 = vmax.f32 %v1423_v25, %v1424_v52  ;;  %v1249_v29 = vadd.f32 %v3555_v40, %v3684_v36 }
 0x1a6   : > { %4086 = vst [vmem:[#allocation21_spill] sm:$0xff] %v3742_v47  ;;  %v1264_v57 = vmax.f32 %v1248_v41, 0.0  ;;  %v1263_v27 = vmax.f32 %v1247_v37, 0.0  ;;  %v1323_v18 = vrot.slane %v3636_v43, 1  ;;  %v1332_v39 = vrot.slane %v3660_v9, 1 }
 0x1a7   : > { %v1266_v3 = vmax.f32 %v1250_v44, 0.0  ;;  %v3759_v56 = vmax.f32 %v1249_v29, 0.0  ;;  %v4087_v0 = vrot.slane %v3675_v54, 2  ;;  %v1348_v25 = vrot.slane %v3711_v11, 2 }
 0x1a8   : > { %v1371_v55 = vsel %vm349_vm0, %v1264_v57, -inf  ;;  %v3768_v40 = vsel %vm750_vm2, %v1264_v57, -inf  ;;  %v3771_v36 = vsel %vm989_vm3, %v1264_v57, -inf  ;;  %v1303_v41 = vrot.slane %v1263_v27, 4 }
 0x1a9   : > { %v1340_v53 = vmax.f32 %v3675_v54, %v4087_v0  ;;  %4088 = vst [vmem:[#allocation22_spill] sm:$0xff] %v3771_v36  ;;  %v3774_v45 = vsel %vm349_vm0, %v1263_v27, -inf  ;;  %v3777_v52 = vsel %vm1508_vm5, %v1263_v27, -inf  ;;  %v1380_v54 = vsel %vm349_vm0, %v1266_v3, -inf }
 0x1aa   : > { %4089 = vst [vmem:[#allocation23_spill] sm:$0xff] %v3777_v52  ;;  %v3781_v37 = vsel %vm750_vm2, %v1266_v3, -inf  ;;  %v3785_v29 = vsel %vm989_vm3, %v1266_v3, -inf  ;;  %v1324_v57 = vmax.f32 %v3636_v43, %v1323_v18  ;;  %v1333_v0 = vmax.f32 %v3660_v9, %v1332_v39 }
 0x1ab   : > { %4090 = vst [vmem:[#allocation24_spill] sm:$0xff] %v3785_v29  ;;  %v1341_v20 = vrot.slane %v1340_v53, 1  ;;  %v1349_v17 = vmax.f32 %v3711_v11, %v1348_v25  ;;  %v1356_v23 = vmax.f32 %v1354_v28, %v1355_v46  ;;  %v1364_v36 = vrot.slane %v1363_v10, 4 }
 0x1ac   : > { %v3791_v52 = vsel %vm1315_vm4, %v1263_v27, -inf  ;;  %v3795_v47 = vsel %vm1315_vm4, %v3759_v56, -inf  ;;  %v1611_v3 = vsel %vm1589_vm6, %v1333_v0, %v1324_v57  ;;  %v4091_v44 = vrot.slane %v3680_v16, 1 }
 0x1ad   : > { %v1342_v9 = vmax.f32 %v1340_v53, %v1341_v20  ;;  %v1350_v18 = vrot.slane %v1349_v17, 1  ;;  %v1357_v39 = vrot.slane %v1356_v23, 2  ;;  %v1365_v11 = vmax.f32 %v1363_v10, %v1364_v36 }
 0x1ae   : > { %v1284_v43 = vmax.f32 %v3680_v16, %v4091_v44  ;;  %v1372_v28 = vmax.f32 %v3791_v52, %v1371_v55  ;;  %v1381_v46 = vmax.f32 %v3795_v47, %v1380_v54  ;;  %v1289_v25 = vrot.slane %v3709_v26, 1 }
 0x1af   : > { %v4092_v29 = vrot.slane %v3725_v8, 2  ;;  %v1351_v57 = vmax.f32 %v1349_v17, %v1350_v18  ;;  %v1358_v0 = vmax.f32 %v1356_v23, %v1357_v39  ;;  %v1366_v6 = vrot.slane %v1365_v11, 2 }
 0x1b0   : > { %v1612_v16 = vsel %vm1591_vm7, %v1342_v9, %v1611_v3  ;;  %v1373_v20 = vrot.slane %v1372_v28, 4  ;;  %v1382_v53 = vrot.slane %v1381_v46, 4  ;;  %v1290_v10 = vmax.f32 %v3709_v26, %v1289_v25 }
 0x1b1   : > { %v1294_v59 = vmax.f32 %v3725_v8, %v4092_v29  ;;  %v1359_v55 = vrot.slane %v1358_v0, 1  ;;  %v1367_v44 = vmax.f32 %v1365_v11, %v1366_v6  ;;  %v1613_v54 = vsel %vm1593_vm8, %v1351_v57, %v1612_v16 }
 0x1b2   : > { %v1299_v15 = vrot.slane %v3738_v12, 2  ;;  %v1374_v58 = vmax.f32 %v1372_v28, %v1373_v20  ;;  %v1383_v60 = vmax.f32 %v1381_v46, %v1382_v53  ;;  %v1304_v17 = vmax.f32 %v1263_v27, %v1303_v41 }
 0x1b3   : > { %v1295_v36 = vrot.slane %v1294_v59, 1  ;;  %v1360_v23 = vmax.f32 %v1358_v0, %v1359_v55  ;;  %v1368_v29 = vrot.slane %v1367_v44, 1  ;;  %v1309_v9 = vrot.slane %v3759_v56, 4 }
 0x1b4   : > { %v1300_v3 = vmax.f32 %v3738_v12, %v1299_v15  ;;  %v1375_v18 = vrot.slane %v1374_v58, 2  ;;  %v1384_v26 = vrot.slane %v1383_v60, 2  ;;  %v1305_v39 = vrot.slane %v1304_v17, 2 }
 0x1b5   : > { %v1296_v8 = vmax.f32 %v1294_v59, %v1295_v36  ;;  %v1590_v6 = vsel %vm1589_vm6, %v3658_v34, %v3642_v2  ;;  %v1369_v11 = vmax.f32 %v1367_v44, %v1368_v29  ;;  %v1614_v25 = vsel %vm1595_vm9, %v1360_v23, %v1613_v54 }
 0x1b6   : > { %v1301_v28 = vrot.slane %v1300_v3, 1  ;;  %v1310_v59 = vmax.f32 %v3759_v56, %v1309_v9  ;;  %v1376_v27 = vmax.f32 %v1374_v58, %v1375_v18  ;;  %v1385_v41 = vmax.f32 %v1383_v60, %v1384_v26 }
 0x1b7   : > { %v1306_v46 = vmax.f32 %v1304_v17, %v1305_v39  ;;  %v1592_v15 = vsel %vm1591_vm7, %v1284_v43, %v1590_v6  ;;  %v1615_v12 = vsel %vm1597_vm10, %v1369_v11, %v1614_v25  ;;  %v4093_v58 = vrot.slane %v3638_v7, 1 }
 0x1b8   : > { %v1302_v57 = vmax.f32 %v1300_v3, %v1301_v28  ;;  %v1311_v0 = vrot.slane %v1310_v59, 2  ;;  %v1594_v16 = vsel %vm1593_vm8, %v1290_v10, %v1592_v15  ;;  %v1377_v20 = vrot.slane %v1376_v27, 1 }
 0x1b9   : > { %v1386_v53 = vrot.slane %v1385_v41, 1  ;;  %v1307_v2 = vrot.slane %v1306_v46, 1  ;;  %v1596_v34 = vsel %vm1595_vm9, %v1296_v8, %v1594_v16  ;;  %v1451_v60 = vmax.f32 %v3638_v7, %v4093_v58 }
 0x1ba   : > { %v1312_v36 = vmax.f32 %v1310_v59, %v1311_v0  ;;  %v1598_v55 = vsel %vm1597_vm10, %v1302_v57, %v1596_v34  ;;  %v4094_v43 = vrot.slane %v3664_v32, 1  ;;  %v1378_v54 = vmax.f32 %v1376_v27, %v1377_v20 }
 0x1bb   : > { %v1387_v17 = vmax.f32 %v1385_v41, %v1386_v53  ;;  %v1308_v23 = vmax.f32 %v1306_v46, %v1307_v2  ;;  %v1466_v10 = vrot.slane %v3697_v38, 1  ;;  %v4095_v3 = vrot.slane %v3713_v35, 2 }
 0x1bc   : > { %v1459_v44 = vmax.f32 %v3664_v32, %v4094_v43  ;;  %v1313_v29 = vrot.slane %v1312_v36, 1  ;;  %v1480_v9 = vrot.slane %v3734_v30, 2  ;;  %v4096_v18 = vrot.slane %v3740_v61, 4 }
 0x1bd   : > { %v1473_v8 = vmax.f32 %v3713_v35, %v4095_v3  ;;  %v1616_v26 = vsel %vm1599_vm11, %v1378_v54, %v1615_v12  ;;  %v1600_v32 = vsel %vm1599_vm11, %v1308_v23, %v1598_v55  ;;  %v1467_v39 = vmax.f32 %v3697_v38, %v1466_v10 }
 0x1be   : > { %v1487_v7 = vmax.f32 %v3740_v61, %v4096_v18  ;;  %v1493_v6 = vmax.f32 %v3791_v52, %v3768_v40  ;;  %v1617_v11 = vsel %vm1315_vm4, %v1387_v17, %v1616_v26  ;;  %v1314_v25 = vmax.f32 %v1312_v36, %v1313_v29 }
 0x1bf   : > { %v1474_v28 = vrot.slane %v1473_v8, 1  ;;  %v1481_v35 = vmax.f32 %v3734_v30, %v1480_v9  ;;  %1834 = vmatprep.mubr.f32.mxu1 %v1617_v11  ;;  %v1501_v61 = vmax.f32 %v3795_v47, %v3781_v37  ;;  %v1643_v41 = vsel %vm1589_vm6, %v1459_v44, %v1451_v60  ;;  %v4106_v11 = vld [vmem:[#allocation18_spill] sm:$0xff] }
 0x1c0   : > { %v1488_v59 = vrot.slane %v1487_v7, 2  ;;  %v1494_v27 = vrot.slane %v1493_v6, 4  ;;  %v1601_v46 = vsel %vm1315_vm4, %v1314_v25, %v1600_v32  ;;  %v1644_v40 = vsel %vm1591_vm7, %v1467_v39, %v1643_v41 }
 0x1c1   : > { %v1475_v38 = vmax.f32 %v1473_v8, %v1474_v28  ;;  %v1482_v15 = vrot.slane %v1481_v35, 1  ;;  %1835 = vmatmul.mubr.f32.vlgmr.msra.gmra.mrb[0].mxu1 %v1601_v46  ;;  %v1502_v57 = vrot.slane %v1501_v61, 4  ;;  %v4097_v30 = vrot.slane %v3721_v22, 1  ;;  %v4107_v28 = vld [vmem:[#allocation19_spill] sm:$0xff] }
 0x1c2   : > { %v1489_v52 = vmax.f32 %v1487_v7, %v1488_v59  ;;  %v1495_v12 = vmax.f32 %v1493_v6, %v1494_v27  ;;  %v4098_v16 = vpack.c.bf16 %v3559_v48, %v3557_v4  ;;  %v1421_v20 = vrot.slane %v3744_v63, 1  ;;  %v4109_v27 = vld [vmem:[#allocation9_spill] sm:$0xff] }
 0x1c3   : > { %v1415_v0 = vmax.f32 %v3721_v22, %v4097_v30  ;;  %v1483_v47 = vmax.f32 %v1481_v35, %v1482_v15  ;;  %v1645_v37 = vsel %vm1593_vm8, %v1475_v38, %v1644_v40  ;;  %v1426_v53 = vrot.slane %v3752_v42, 2  ;;  %v4112_v40 = vld [vmem:[#allocation20_spill] sm:$0xff]  ;;  %v4113_v30 = vld [vmem:[#allocation21_spill] sm:$0xff] }
 0x1c4   : > { %2684 = vmatpush3.bf16.msra.mxu1 %v4098_v16  ;;  %v1490_v2 = vrot.slane %v1489_v52, 1  ;;  %v1496_v34 = vrot.slane %v1495_v12, 2  ;;  %v1503_v36 = vmax.f32 %v1501_v61, %v1502_v57  ;;  %v4099_v55 = vpack.c.bf16 %v3563_v49, %v3561_v13  ;;  %v4110_v61 = vld [vmem:[#allocation8_spill] sm:$0xff] }
 0x1c5   : > { %v4100_v22 = vrot.slane %v3774_v45, 4  ;;  %v1646_v4 = vsel %vm1595_vm9, %v1483_v47, %v1645_v37  ;;  %v1422_v48 = vmax.f32 %v3744_v63, %v1421_v20  ;;  %v1427_v60 = vmax.f32 %v3752_v42, %v1426_v53  ;;  %v4115_v47 = vld [vmem:[#allocation22_spill] sm:$0xff]  ;;  %v4116_v37 = vld [vmem:[#allocation23_spill] sm:$0xff] }
 0x1c6   : > { %2686 = vmatprep.subr.bf16.mxu1 %v4099_v55  ;;  %v1437_v43 = vsel %vm349_vm0, %v3759_v56, -inf  ;;  %v1491_v44 = vmax.f32 %v1489_v52, %v1490_v2  ;;  %v1497_v54 = vmax.f32 %v1495_v12, %v1496_v34  ;;  %v1504_v17 = vrot.slane %v1503_v36, 2  ;;  %v4117_v53 = vld [vmem:[#allocation11_spill] sm:$0xff]  ;;  %v4118_v2 = vld [vmem:[#allocation10_spill] sm:$0xff] }
 0x1c7   : > { %v1432_v58 = vmax.f32 %v3774_v45, %v4100_v22  ;;  %v4101_v13 = vpack.c.bf16 %v3567_v50, %v3565_v33  ;;  %v1428_v49 = vrot.slane %v1427_v60, 1  ;;  %v1438_v10 = vrot.slane %v1437_v43, 4 }
 0x1c8   : > { %v1627_v45 = vsel %vm1589_vm6, %v3669_v14, %v3646_v51  ;;  %v4102_v63 = vrot.slane %v3640_v62, 1  ;;  %v1498_v29 = vrot.slane %v1497_v54, 1  ;;  %v1505_v3 = vmax.f32 %v1503_v36, %v1504_v17 }
 0x1c9   : > { %v1433_v23 = vrot.slane %v1432_v58, 2  ;;  %2688 = vmatpush3.bf16.msra.mxu1 %v4101_v13  ;;  %v1647_v8 = vsel %vm1597_vm10, %v1491_v44, %v1646_v4  ;;  %v4103_v9 = vpack.c.bf16 %v3571_v21, %v3569_v1  ;;  %v1429_v50 = vmax.f32 %v1427_v60, %v1428_v49  ;;  %v4120_v4 = vld [vmem:[#allocation13_spill] sm:$0xff] }
 0x1ca   : > { %v1517_v42 = vmax.f32 %v3640_v62, %v4102_v63  ;;  %v1439_v18 = vmax.f32 %v1437_v43, %v1438_v10  ;;  %v1628_v7 = vsel %vm1591_vm7, %v3702_v31, %v1627_v45  ;;  %v4104_v51 = vrot.slane %v3672_v19, 1  ;;  %v1709_v43 = vld [vmem:[#allocation2 + $0x150] sm:$0xff]  ;;  %v1710_v44 = vld [vmem:[#allocation2 + $0x158] sm:$0xff]  ;;  %v1727_v10 = vld [vmem:[#allocation2 + $0x1e0] sm:$0xff] }
 0x1cb   : > { %2690 = vmatprep.subr.bf16.mxu1 %v4103_v9  ;;  %v1434_v33 = vmax.f32 %v1432_v58, %v1433_v23  ;;  %v1499_v26 = vmax.f32 %v1497_v54, %v1498_v29  ;;  %v1506_v62 = vrot.slane %v1505_v3, 1  ;;  %v1629_v39 = vsel %vm1593_vm8, %v1415_v0, %v1628_v7  ;;  %v4123_v23 = vld [vmem:[#allocation24_spill] sm:$0xff]  ;;  %v1728_v45 = vld [vmem:[#allocation2 + $0x1e8] sm:$0xff] }
 0x1cc   : > { %v1526_v14 = vmax.f32 %v3672_v19, %v4104_v51  ;;  %v4105_v6 = vpack.c.bf16 %v3575_v5, %v3573_v24  ;;  %v1440_v1 = vrot.slane %v1439_v18, 2  ;;  %v1630_v21 = vsel %vm1595_vm9, %v1422_v48, %v1629_v39  ;;  %v4121_v48 = vld [vmem:[#allocation12_spill] sm:$0xff] }
 0x1cd   : > { %v1435_v32 = vrot.slane %v1434_v33, 1  ;;  %v1534_v25 = vrot.slane %v4106_v11, 1  ;;  %v4108_v31 = vrot.slane %v4107_v28, 2  ;;  %v1507_v59 = vmax.f32 %v1505_v3, %v1506_v62  ;;  %v4128_v62 = vld [vmem:[#allocation16_spill] sm:$0xff] }
 0x1ce   : > { %2692 = vmatpush3.bf16.msra.mxu1 %v4105_v6  ;;  %v1648_v19 = vsel %vm1599_vm11, %v1499_v26, %v1647_v8  ;;  %v4111_v41 = vpack.c.bf16 %v4109_v27, %v4110_v61  ;;  %v1631_v24 = vsel %vm1597_vm10, %v1429_v50, %v1630_v21  ;;  %v1441_v5 = vmax.f32 %v1439_v18, %v1440_v1  ;;  %v4124_v50 = vld [vmem:[#allocation15_spill] sm:$0xff]  ;;  %v4125_v18 = vld [vmem:[#allocation14_spill] sm:$0xff] }
 0x1cf   : > { %v1542_v35 = vmax.f32 %v4107_v28, %v4108_v31  ;;  %v1436_v46 = vmax.f32 %v1434_v33, %v1435_v32  ;;  %v1535_v38 = vmax.f32 %v4106_v11, %v1534_v25  ;;  %v1550_v52 = vrot.slane %v4112_v40, 2  ;;  %v1711_v6 = vld [vmem:[#allocation2 + $0x160] sm:$0xff]  ;;  %v1712_v1 = vld [vmem:[#allocation2 + $0x168] sm:$0xff]  ;;  %v1729_v28 = vld [vmem:[#allocation2 + $0x1f0] sm:$0xff] }
 0x1d0   : > { %2694 = vmatprep.subr.bf16.mxu1 %v4111_v41  ;;  %v1649_v12 = vsel %vm1315_vm4, %v1507_v59, %v1648_v19  ;;  %v4114_v0 = vrot.slane %v4113_v30, 4  ;;  %v1565_v20 = vmax.f32 %v4116_v37, %v4115_v47  ;;  %v4119_v34 = vpack.c.bf16 %v4117_v53, %v4118_v2  ;;  %v1730_v31 = vld [vmem:[#allocation2 + $0x1f8] sm:$0xff]  ;;  %v1732_v47 = vld [vmem:[#allocation2 + $0x208] sm:$0xff]  ;;  %v1749_v53 = vld [vmem:[#allocation2 + $0x290] sm:$0xff] }
 0x1d1   : > { %v1543_v15 = vrot.slane %v1542_v35, 1  ;;  %v1632_v57 = vsel %vm1599_vm11, %v1436_v46, %v1631_v24  ;;  %1904 = vmatprep.mubr.f32.mxu1 %v1649_v12  ;;  %v1442_v36 = vrot.slane %v1441_v5, 1  ;;  %v1551_v22 = vmax.f32 %v4112_v40, %v1550_v52  ;;  %v1713_v46 = vld [vmem:[#allocation2 + $0x170] sm:$0xff]  ;;  %v1714_v24 = vld [vmem:[#allocation2 + $0x178] sm:$0xff]  ;;  %v1747_v40 = vld [vmem:[#allocation2 + $0x280] sm:$0xff] }
 0x1d2   : > { %v1558_v16 = vmax.f32 %v4113_v30, %v4114_v0  ;;  %2696 = vmatpush3.bf16.msra.mxu1 %v4119_v34  ;;  %v1572_v58 = vsel %vm1508_vm5, %v3759_v56, -inf  ;;  %v4122_v60 = vpack.c.bf16 %v4120_v4, %v4121_v48  ;;  %v1566_v17 = vrot.slane %v1565_v20, 4  ;;  %v1748_v52 = vld [vmem:[#allocation2 + $0x288] sm:$0xff]  ;;  %v1750_v2 = vld [vmem:[#allocation2 + $0x298] sm:$0xff]  ;;  %v1751_v4 = vld [vmem:[#allocation2 + $0x2a0] sm:$0xff] }
 0x1d3   : > { %v1544_v55 = vmax.f32 %v1542_v35, %v1543_v15  ;;  %v1574_v13 = vmax.f32 %v1572_v58, %v4123_v23  ;;  %v1659_v49 = vsel %vm1589_vm6, %v1526_v14, %v1517_v42  ;;  %v1443_v63 = vmax.f32 %v1441_v5, %v1442_v36  ;;  %v4127_v14 = vld [vmem:[#allocation17_spill] sm:$0xff]  ;;  %v1752_v48 = vld [vmem:[#allocation2 + $0x2a8] sm:$0xff] }
 0x1d4   : > { %2698 = vmatprep.subr.bf16.mxu1 %v4122_v60  ;;  %v1559_v54 = vrot.slane %v1558_v16, 2  ;;  %v1552_v29 = vrot.slane %v1551_v22, 1  ;;  %v1660_v3 = vsel %vm1591_vm7, %v1535_v38, %v1659_v49  ;;  %v1567_v56 = vmax.f32 %v1565_v20, %v1566_v17  ;;  %v1734_v58 = vld [vmem:[#allocation2 + $0x218] sm:$0xff]  ;;  %v1753_v17 = vld [vmem:[#allocation2 + $0x2b0] sm:$0xff] }
 0x1d5   : > { %v1575_v9 = vrot.slane %v1574_v13, 4  ;;  %v1661_v33 = vsel %vm1593_vm8, %v1544_v55, %v1660_v3  ;;  %v4126_v7 = vpack.c.bf16 %v4124_v50, %v4125_v18  ;;  %v2703_v51 = vpack.c.bf16 %v1710_v44, %v1709_v43  ;;  %v1735_v44 = vld [vmem:[#allocation2 + $0x220] sm:$0xff]  ;;  %v1754_v23 = vld [vmem:[#allocation2 + $0x2b8] sm:$0xff] }
 0x1d6   : > { %v1560_v8 = vmax.f32 %v1558_v16, %v1559_v54  ;;  %v3927_v26 = vsel %vm1315_vm4, %v1443_v63, %v1632_v57  ;;  %v1553_v42 = vmax.f32 %v1551_v22, %v1552_v29  ;;  %v4129_v32 = vpack.c.bf16 %v4127_v14, %v4128_v62  ;;  %v1731_v16 = vld [vmem:[#allocation2 + $0x200] sm:$0xff]  ;;  %v1733_v22 = vld [vmem:[#allocation2 + $0x210] sm:$0xff]  ;;  %v1736_v54 = vld [vmem:[#allocation2 + $0x228] sm:$0xff] }
 0x1d7   : > { %2700 = vmatpush3.bf16.msra.mxu1 %v4126_v7  ;;  %v2705_v39 = vpack.c.bf16 %v1728_v45, %v1727_v10  ;;  %v1568_v11 = vrot.slane %v1567_v56, 2  ;;  %v1576_v25 = vmax.f32 %v1574_v13, %v1575_v9  ;;  %v2707_v61 = vpack.c.bf16 %v1712_v1, %v1711_v6  ;;  %v1737_v10 = vld [vmem:[#allocation2 + $0x230] sm:$0xff]  ;;  %v1738_v45 = vld [vmem:[#allocation2 + $0x238] sm:$0xff]  ;;  %v1755_v63 = vld [vmem:[#allocation2 + $0x2c0] sm:$0xff] }
 0x1d8   : > { %2702 = vmatprep.subr.bf16.mxu1 %v4129_v32  ;;  %v1561_v21 = vrot.slane %v1560_v8, 1  ;;  %v1662_v35 = vsel %vm1595_vm9, %v1553_v42, %v1661_v33  ;;  %v2709_v41 = vpack.c.bf16 %v1730_v31, %v1729_v28  ;;  %v2711_v30 = vpack.c.bf16 %v1714_v24, %v1713_v46  ;;  %v1756_v29 = vld [vmem:[#allocation2 + $0x2c8] sm:$0xff]  ;;  %v1757_v33 = vld [vmem:[#allocation2 + $0x2d0] sm:$0xff]  ;;  %v1758_v50 = vld [vmem:[#allocation2 + $0x2d8] sm:$0xff] }
 0x1d9   : > { %v1569_v19 = vmax.f32 %v1567_v56, %v1568_v11  ;;  %v1577_v27 = vrot.slane %v1576_v25, 2  ;;  %v2713_v0 = vpack.c.bf16 %v1748_v52, %v1747_v40  ;;  %v2715_v36 = vpack.c.bf16 %v1732_v47, %v1731_v16  ;;  %v1739_v56 = vld [vmem:[#allocation2 + $0x240] sm:$0xff]  ;;  %v1740_v9 = vld [vmem:[#allocation2 + $0x248] sm:$0xff]  ;;  %v1742_v42 = vld [vmem:[#allocation2 + $0x258] sm:$0xff] }
 0x1da   : > { %v1562_v59 = vmax.f32 %v1560_v8, %v1561_v21  ;;  %v2717_v55 = vpack.c.bf16 %v1750_v2, %v1749_v53  ;;  %v2719_v60 = vpack.c.bf16 %v1734_v58, %v1733_v22  ;;  %v2721_v43 = vpack.c.bf16 %v1752_v48, %v1751_v4  ;;  %v1759_v14 = vld [vmem:[#allocation2 + $0x2e0] sm:$0xff]  ;;  %v1760_v62 = vld [vmem:[#allocation2 + $0x2e8] sm:$0xff]  ;;  %v1761_v21 = vld [vmem:[#allocation2 + $0x2f0] sm:$0xff] }
 0x1db   : > { %2704 = vmatpush3.bf16.msra.mxu1 %v2703_v51  ;;  %v1570_v5 = vrot.slane %v1569_v19, 1  ;;  %v1578_v38 = vmax.f32 %v1576_v25, %v1577_v27  ;;  %v2723_v13 = vpack.c.bf16 %v1736_v54, %v1735_v44  ;;  %v2725_v49 = vpack.c.bf16 %v1754_v23, %v1753_v17  ;;  %v1741_v51 = vld [vmem:[#allocation2 + $0x250] sm:$0xff]  ;;  %v1743_v6 = vld [vmem:[#allocation2 + $0x260] sm:$0xff]  ;;  %v1744_v1 = vld [vmem:[#allocation2 + $0x268] sm:$0xff] }
 0x1dc   : > { %2706 = vmatprep.subr.bf16.mxu1 %v2705_v39  ;;  %v1663_v15 = vsel %vm1597_vm10, %v1562_v59, %v1662_v35  ;;  %v2727_v3 = vpack.c.bf16 %v1738_v45, %v1737_v10  ;;  %v2729_v8 = vpack.c.bf16 %v1756_v29, %v1755_v63  ;;  %v2731_v18 = vpack.c.bf16 %v1740_v9, %v1739_v56  ;;  %v1762_v11 = vld [vmem:[#allocation2 + $0x2f8] sm:$0xff]  ;;  %v1745_v31 = vld [vmem:[#allocation2 + $0x270] sm:$0xff]  ;;  %v1982_v27 = vld [vmem:[%s4044_s5 + $0x8] sm:$0xff] }
 0x1dd   : > { %v1571_v12 = vmax.f32 %v1569_v19, %v1570_v5  ;;  %v1579_v57 = vrot.slane %v1578_v38, 1  ;;  %v2733_v7 = vpack.c.bf16 %v1758_v50, %v1757_v33  ;;  %v2735_v32 = vpack.c.bf16 %v1742_v42, %v1741_v51  ;;  %v1746_v35 = vld [vmem:[#allocation2 + $0x278] sm:$0xff]  ;;  %v1981_v19 = vld [vmem:[%s4044_s5] sm:$0xff]  ;;  %v1987_v40 = vld [vmem:[%s4044_s5 + $0x30] sm:$0xff] }
 0x1de   : > { %v2737_v39 = vpack.c.bf16 %v1760_v62, %v1759_v14  ;;  %v2739_v25 = vpack.c.bf16 %v1744_v1, %v1743_v6  ;;  %v2741_v28 = vpack.c.bf16 %v1762_v11, %v1761_v21  ;;  %v2743_v59 = vpack.c.bf16 %v1746_v35, %v1745_v31  ;;  %v1984_v24 = vld [vmem:[%s4044_s5 + $0x18] sm:$0xff]  ;;  %v1985_v5 = vld [vmem:[%s4044_s5 + $0x20] sm:$0xff]  ;;  %v1991_v16 = vld [vmem:[%s4044_s5 + $0x50] sm:$0xff] }
 0x1df   : > { %2708 = vmatpush3.bf16.msra.mxu1 %v2707_v61  ;;  %v1580_v37 = vmax.f32 %v1578_v38, %v1579_v57  ;;  %v1664_v20 = vsel %vm1599_vm11, %v1571_v12, %v1663_v15  ;;  %v1983_v61 = vld [vmem:[%s4044_s5 + $0x10] sm:$0xff]  ;;  %v2746_v46 = vpack.c.bf16 %v1982_v27, %v1981_v19  ;;  %v1986_v38 = vld [vmem:[%s4044_s5 + $0x28] sm:$0xff]  ;;  %v1988_v52 = vld [vmem:[%s4044_s5 + $0x38] sm:$0xff] }
 0x1e0   : > { %2710 = vmatprep.subr.bf16.mxu1 %v2709_v41  ;;  %v2972_v41 = vmov 0.0|0.0   ;;  %v2752_v15 = vpack.c.bf16 %v1986_v38, %v1985_v5  ;;  %v2755_v12 = vpack.c.bf16 %v1988_v52, %v1987_v40  ;;  %v1989_v57 = vld [vmem:[%s4044_s5 + $0x40] sm:$0xff]  ;;  %v1992_v47 = vld [vmem:[%s4044_s5 + $0x58] sm:$0xff]  ;;  %v1994_v53 = vld [vmem:[%s4044_s5 + $0x68] sm:$0xff] }
 0x1e1   : > { %v1665_v34 = vsel %vm1315_vm4, %v1580_v37, %v1664_v20  ;;  %v2761_v37 = vpack.c.bf16 %v1992_v47, %v1991_v16  ;;  %v1993_v20 = vld [vmem:[%s4044_s5 + $0x60] sm:$0xff]  ;;  %v1995_v2 = vld [vmem:[%s4044_s5 + $0x70] sm:$0xff] }
 0x1e2   : > { %v2247_v29 = vld [vmem:[%s4045_s6] ss:$0 sm:$0xff] }
 0x1e3   : > { %2712 = vmatpush3.bf16.msra.mxu1 %v2711_v30  ;;  %v1990_v30 = vld [vmem:[%s4044_s5 + $0x48] sm:$0xff] }
 0x1e4   : > { %2714 = vmatprep.subr.bf16.mxu1 %v2713_v0  ;;  %v2758_v0 = vpack.c.bf16 %v1990_v30, %v1989_v57 }
 0x1e6   : > { %1905 = vmatmul.mubr.f32.vlgmr.msra.gmra.mrb[2].mxu1 %v3927_v26 }
 0x1e7   : > { %2716 = vmatpush3.bf16.msra.mxu1 %v2715_v36  ;;  %1974 = vmatprep.mubr.f32.mxu1 %v1665_v34  ;;  %v2764_v34 = vpack.c.bf16 %v1994_v53, %v1993_v20  ;;  %v1996_v36 = vld [vmem:[%s4044_s5 + $0x78] sm:$0xff] }
 0x1e8   : > { %2718 = vmatprep.subr.bf16.mxu1 %v2717_v55  ;;  %v2974_v55 = vmov 0.0   ;;  %v2767_v22 = vpack.c.bf16 %v1996_v36, %v1995_v2 }
 0x1eb   : > { %2720 = vmatpush3.bf16.msra.mxu1 %v2719_v60  ;;  %v2246_v60 = vld [vmem:[%s4043_s4] ss:$0 sm:$0xff] }
 0x1ec   : > { %2722 = vmatprep.subr.bf16.mxu1 %v2721_v43 }
 0x1ef   : > { %2724 = vmatpush3.bf16.msra.mxu1 %v2723_v13 }
 0x1f0   : > { %2726 = vmatprep.subr.bf16.mxu1 %v2725_v49 }
 0x1f3   : > { %2728 = vmatpush3.bf16.msra.mxu1 %v2727_v3 }
 0x1f4   : > { %2730 = vmatprep.subr.bf16.mxu1 %v2729_v8 }
 0x1f7   : > { %2732 = vmatpush3.bf16.msra.mxu1 %v2731_v18 }
 0x1f8   : > { %2734 = vmatprep.subr.bf16.mxu1 %v2733_v7 }
 0x1fb   : > { %2736 = vmatpush3.bf16.msra.mxu1 %v2735_v32 }
 0x1fc   : > { %2738 = vmatprep.subr.bf16.mxu1 %v2737_v39 }
 0x1ff   : > { %2740 = vmatpush3.bf16.msra.mxu1 %v2739_v25 }
 0x200   : > { %2742 = vmatprep.subr.bf16.mxu1 %v2741_v28 }
 0x203   : > { %2744 = vmatpush3.bf16.msra.mxu1 %v2743_v59 }
 0x204   : > { %2745 = vmatprep.subr.bf16.mxu1 %v2972_v41 }
 0x206   : > { %1975 = vmatmul.mubr.f32.vlgmr.msra.gmra.mrb[4].mxu1 %v3927_v26  ;;  %v2749_v26 = vpack.c.bf16 %v1984_v24, %v1983_v61 }
 0x207   : > { %2747 = vmatpush3.bf16.msra.mxu1 %v2746_v46  ;;  %2614 = vmatprep.mubr.msk.f32.mxu1 %vm2973_vm12, %v2974_v55 }
 0x208   : > { %2748 = vmatprep.subr.bf16.mxu1 %v2972_v41 }
 0x20b   : > { %2750 = vmatpush3.bf16.msra.mxu1 %v2749_v26 }
 0x20c   : > { %2751 = vmatprep.subr.bf16.mxu1 %v2972_v41 }
 0x20f   : > { %2753 = vmatpush3.bf16.msra.mxu1 %v2752_v15 }
 0x210   : > { %2754 = vmatprep.subr.bf16.mxu1 %v2972_v41 }
 0x213   : > { %2756 = vmatpush3.bf16.msra.mxu1 %v2755_v12 }
 0x214   : > { %2757 = vmatprep.subr.bf16.mxu1 %v2972_v41 }
 0x217   : > { %2759 = vmatpush3.bf16.msra.mxu1 %v2758_v0 }
 0x218   : > { %2760 = vmatprep.subr.bf16.mxu1 %v2972_v41 }
 0x21b   : > { %2762 = vmatpush3.bf16.msra.mxu1 %v2761_v37 }
 0x21c   : > { %2763 = vmatprep.subr.bf16.mxu1 %v2972_v41 }
 0x21f   : > { %2765 = vmatpush3.bf16.msra.mxu1 %v2764_v34 }
 0x220   : > { %2766 = vmatprep.subr.bf16.mxu1 %v2972_v41 }
 0x223   : > { %2768 = vmatpush3.bf16.msra.mxu1 %v2767_v22 }
 0x294   : > { %v2364_v58 = vpop.f32.mrb[0].mxu1 }
 0x295   : > { %v2365_v4 = vpop.f32.mrb[1].mxu1 }
 0x296   : > { %v2366_v48 = vadd.f32 %v2365_v4, %v2364_v58 }
 0x298   : > { %v1837_v54 = vadd.f32 %v2366_v48, %v2246_v60 }
 0x2b9   : > { %v2399_v43 = vpop.f32.mrb[2].mxu1 }
 0x2ba   : > { %v2400_v44 = vpop.f32.mrb[3].mxu1 }
 0x2bb   : > { %v2401_v17 = vadd.f32 %v2400_v44, %v2399_v43 }
 0x2bd   : > { %v1907_v23 = vadd.f32 %v2401_v17, %v1837_v54 }
 0x2d9   : > { %v2434_v13 = vpop.f32.mrb[4].mxu1 }
 0x2da   : > { %v2435_v49 = vpop.f32.mrb[5].mxu1 }
 0x2db   : > { %v2436_v10 = vadd.f32 %v2435_v49, %v2434_v13 }
 0x2dd   : > { %v1977_v45 = vadd.f32 %v2436_v10, %v1907_v23 }
 0x2df   : > { %v1980_v63 = vmax.f32 %v1977_v45, 0.0 }
 0x2e1   : > { %2615 = vmatmul.mubr.f32.vlgmr.msra.gmra.mrb[6].mxu1 %v1980_v63 }
 0x3b4   : > { %v2070_v3 = vpop.f32.mrb[6].mxu1 }
 0x3b5   : > { %v2071_v8 = vadd.f32 %v2247_v29, %v2070_v3  ;;  %v2616_v56 = vpop.f32.mrb[7].mxu1 }
 0x3b7   : > { %2074 = vst [vmem:[%s289_s23] sm:$0xff] %v2071_v8 }
 0x3b8   : > { %2914 = shalt.err (!%p2911_p7)
}
 0x3b9   : > { %s2915_s16 = scalar_lea.hbm %s3997_s14, 128  ;;  %s2919_s13 = scalar_lea.hbm %s4046_s7, 256 }
 0x3ba   : > { %p2916_p8 = scmp.ne.s32.totalorder %s3997_s14, %s2915_s16  ;;  %p2920_p1 = scmp.lt.u32.totalorder %s3997_s14, %s4046_s7 }
 0x3bb   : > { %p2921_p0 = scmp.lt.u32.totalorder %s2919_s13, %s2915_s16  ;;  %p2923_p6 = scmp.lt.u32.totalorder %s2915_s16, %s3997_s14 }
 0x3bc   : > { %p2917_p11 = pnand %p2916_p8, %p4130_p9 }
 0x3bd   : > { %p2922_p5 = por %p2921_p0, %p2920_p1 }
 0x3be   : > { %p2918_p13 = pneg %p2917_p11 }
 0x3bf   : > { %p2924_p10 = por %p2923_p6, %p2922_p5 }
 0x3c1   : > { %p2925_p12 = pnand %p2924_p10, %p2918_p13 }
 0x3c3   : > { %2928 = shalt.err (!%p2925_p12)
}
 0x3c4   : > { %2822 = dma.vmem_to_hbm [thread:$0]  (%p4130_p9), %s3999_s29, 128, %s3997_s14, %s2076_s17  }
 0x3c5 PF: > { %p2834_p2 = scmp.ge.s32.totalorder %s2967_s27, 2  ;;  %s2101_s9 = sand.u32 1, %s2955_s24  }
 0x3c6   : > { %p4131_p3 = scmp.ne.s32.totalorder %s4067_s12, 0  ;;  %s2102_s8 = scalar_lea.sflag [#allocation4], %s2101_s9 }
 0x3c8   : > { %p2829_p4 = pnand %p2834_p2, %p4131_p3 }
 0x3ca   : > { %2950 = dma.done.wait (!%p2829_p4), %s2102_s8, 128  }
 0x3cb   : > { %2952 = vsyncadd (!%p2829_p4), %s2102_s8, 4294967168  ;;  %p18_p7 = scmp.ge.s32.totalorder %s3041_s30, 4   ;;  %s4132_s24 = smov %s2959_s25 }
 0x3cc   : > { %s4133_s25 = smov %s2963_s26  ;;  %s4134_s26 = smov %s3052_s10 }
 0x3cd   : > { %s4135_s27 = smov %s3041_s30  ;;  %20 = sbr.rel (!%p18_p7) target bundleno = 4 (0x4), region = 91 }
 0x3d4   :  { %2107 = vsyncpa [#allocation3], 1 }
 0x3d5   :  { %2109 = vsyncpa [#allocation3 + $0x1], 1 }
 0x3d6   :  { %2110 = vsyncpa [#allocation4], 1 }
 0x3d7   :  { %2112 = vsyncpa [#allocation4 + $0x1], 1 }

</bundles_post_ra>
